<compile_context>
chip_gen: v7x
topology: tpu7x:2x2x1
jax: 0.10.0
libtpu: 0.0.40
codegen_flags: <defaults>
</compile_context>

<pallas_src>
import jax
import jax.numpy as jnp
from jax import lax
from jax.experimental import pallas as pl
from jax.experimental.pallas import tpu as pltpu

# ---- model hyperparameters (small, consistent with the module) ----
D = 32                  # model dim
H_FF = 2 * D            # FFN hidden (hidden_dim=None -> dim*2)
NUM_HEADS = 4
HEAD_DIM = D // NUM_HEADS
K_SIZE = 31             # depthwise conv kernel size
PAD = (K_SIZE - 1) // 2           # 'same' padding = 15
ALIGN_PAD = 16                    # sublane-aligned zero padding used in-kernel
C_EXP = 2 * D           # channels after GLU (expansion_factor=2)
EPS = 1e-5

SLAB_COLS = 128         # lane-dense packing width for both parameter slabs


def _round8(n):
    return -(-n // 8) * 8


# ---------------- slab layouts (shared by wrapper packing & kernel slicing) ----------------
def _w_layout(S):
    """bf16 slab: every MXU operand (2-D matmul weights + block-diag softmax matrix)."""
    HS = NUM_HEADS * S
    return (
        ("ff1_w1", (D, H_FF)),
        ("ff1_w2", (H_FF, D)),
        ("mh_wqkv", (D, 3 * D)),
        ("mh_wo", (D, D)),
        ("cv_w1", (D, 4 * D)),
        ("cv_w2", (C_EXP, D)),
        ("ff2_w1", (D, H_FF)),
        ("ff2_w2", (H_FF, D)),
        ("att_blk", (HS, HS)),          # 0/1 block-diagonal head-block matrix
    )


def _b_layout(S):
    """f32 slab: depthwise taps, head mask, and all 1-D bias / norm vectors."""
    HS = NUM_HEADS * S
    return (
        # multi-row (8-aligned) entries first
        ("cv_wdw", (K_SIZE, C_EXP)),     # depthwise taps, (K, C) layout
        ("mh_vmask", (HS, D)),           # mask[m, c] = (head(c) == block(m))
        # single-row entries
        ("ff1_b1", (1, H_FF)), ("ff1_b2", (1, D)),
        ("mh_ln_g", (1, D)), ("mh_ln_b", (1, D)),
        ("mh_bqkv", (1, 3 * D)), ("mh_bo", (1, D)),
        ("cv_ln_g", (1, D)), ("cv_ln_b", (1, D)),
        ("cv_b1", (1, 4 * D)), ("cv_bdw", (1, C_EXP)),
        ("cv_bn_g", (1, C_EXP)), ("cv_bn_b", (1, C_EXP)), ("cv_b2", (1, D)),
        ("ff2_b1", (1, H_FF)), ("ff2_b2", (1, D)),
        ("fin_ln_g", (1, D)), ("fin_ln_b", (1, D)),
    )


def _offsets(layout):
    off = 0
    table = {}
    for name, (r, c) in layout:
        alloc = r if r == 1 else _round8(r)
        if r > 1:
            assert off % 8 == 0, name     # multi-row slab entries start 8-aligned
        table[name] = (off, r, c)
        off += alloc
    return table, _round8(off)


# ---------------- the kernel ----------------
def conformer_kernel(x_ref, w_ref, b_ref, o_ref):
    x = x_ref[...]
    B, S, _ = x.shape
    M = B * S
    HS = NUM_HEADS * S

    w_tab, _ = _offsets(_w_layout(S))
    b_tab, _ = _offsets(_b_layout(S))
    f32 = jnp.float32
    bf16 = jnp.bfloat16

    def getw(name):
        off, r, c = w_tab[name]
        return w_ref[off:off + r, :c]                      # bf16, static ref slice

    def getv(name):
        off, r, c = b_tab[name]
        return b_ref[off:off + r, :c]                      # f32, static ref slice

    def linear(t, wn, bn):
        w = getw(wn)                                       # bf16 weights (MXU)
        y = jnp.dot(t.reshape(M, t.shape[-1]).astype(bf16), w,
                    preferred_element_type=f32) + getv(bn)
        return y.reshape(B, S, w.shape[1])

    def layernorm(t, gn, bn):
        mu = jnp.mean(t, axis=-1, keepdims=True)
        var = jnp.mean(jnp.square(t - mu), axis=-1, keepdims=True)
        return (t - mu) * lax.rsqrt(var + EPS) * getv(gn) + getv(bn)

    def swish(t):
        return t * jax.nn.sigmoid(t)

    # ---- FeedForwardModule #1: x + 0.5*(Linear -> Swish -> Linear) ----
    x = x + 0.5 * linear(swish(linear(x, "ff1_w1", "ff1_b1")), "ff1_w2", "ff1_b2")

    # ---- MHSAModule: x + MHA(LayerNorm(x)) ----
    xn = layernorm(x, "mh_ln_g", "mh_ln_b")
    qkv = linear(xn, "mh_wqkv", "mh_bqkv")                 # [B, S, 3D]
    q = qkv[..., :D] * (1.0 / (HEAD_DIM ** 0.5))           # fold softmax scale into q
    k = qkv[..., D:2 * D]
    v = qkv[..., 2 * D:]

    # All heads per stage via block-masked K/V slabs [B, H*S, D]: one aligned
    # replication-concat + one multiply by the PRECOMPUTED head mask (no iota /
    # compare / per-head slices in-kernel).
    vmask = getv("mh_vmask")                               # [HS, D] 0/1
    k_exp = jnp.concatenate([k] * NUM_HEADS, axis=1) * vmask   # [B, H*S, D]
    v_exp = jnp.concatenate([v] * NUM_HEADS, axis=1) * vmask   # [B, H*S, D]

    s = jnp.einsum("bqc,bmc->bqm", q.astype(bf16), k_exp.astype(bf16),
                   preferred_element_type=f32)             # [B, S, H*S]
    # Shared per-row stabilizer over all head blocks (algebraically valid).
    s = s - jnp.max(s, axis=-1, keepdims=True)
    p = jnp.exp(s)
    # Per-head softmax denominator via one block-diagonal matmul (MXU, bf16
    # operands), then an EUP approx reciprocal; +1e-20 guard so a fully
    # underflowed head block yields 0 instead of Inf/NaN.
    denom = jnp.dot(p.reshape(M, HS).astype(bf16), getw("att_blk"),
                    preferred_element_type=f32).reshape(B, S, HS)
    p = p * pl.reciprocal(denom + 1e-20, approx=True)
    ctx = jnp.einsum("bqm,bmc->bqc", p.astype(bf16), v_exp.astype(bf16),
                     preferred_element_type=f32)           # [B, S, D]
    x = x + linear(ctx, "mh_wo", "mh_bo")

    # ---- ConvModule: x + (LN -> PW(4D) -> GLU -> DWConv -> BN -> Swish -> PW(D)) ----
    cn = layernorm(x, "cv_ln_g", "cv_ln_b")
    y = linear(cn, "cv_w1", "cv_b1")                       # [B, S, 4D]
    g = y[..., :C_EXP] * jax.nn.sigmoid(y[..., C_EXP:])    # GLU -> [B, S, 2D]

    # Depthwise conv along seq ('same' zero padding), fully in registers.
    # Window offset o = kk + 1 (aligned 16-row zero concat => left pad 16 = PAD+1).
    # Taps are restructured into 8-aligned groups: o = 8*q + r.  Per r-step the
    # padded buffer is shifted by ONE sublane with pltpu.roll (XLU slot; shift
    # npad-1 == jnp.roll shift -1, i.e. cur[i] <- prev[i+1]); per tap we then
    # take an ALIGNED window cur[:, 8q:8q+S, :] and multiply by the (1, C) tap
    # row loaded from the f32 slab (broadcast happens inside the multiply; no
    # (K, S, C) broadcast held live, no misaligned slices).
    zpad = jnp.zeros((B, ALIGN_PAD, C_EXP), f32)
    gp = jnp.concatenate([zpad, g, zpad], axis=1)          # [B, S+32, 2D]
    npad = S + 2 * ALIGN_PAD
    wdw_off = b_tab["cv_wdw"][0]

    acc = None
    cur = gp
    for r in range(8):
        if r > 0:
            cur = pltpu.roll(cur, shift=npad - 1, axis=1)  # unit sublane shift
        for q_ in range(4):
            o = 8 * q_ + r
            if o < 1 or o > K_SIZE:
                continue
            kk = o - 1
            tap = b_ref[wdw_off + kk:wdw_off + kk + 1, :C_EXP]   # (1, 2D) f32
            win = cur[:, 8 * q_:8 * q_ + S, :]                    # aligned slice
            term = win * tap
            acc = term if acc is None else acc + term
    dconv = acc + getv("cv_bdw")

    # BatchNorm1d (training-mode batch statistics over batch & seq, per channel)
    mu = jnp.mean(dconv, axis=(0, 1), keepdims=True)
    var = jnp.mean(jnp.square(dconv - mu), axis=(0, 1), keepdims=True)
    bn = (dconv - mu) * lax.rsqrt(var + EPS) * getv("cv_bn_g") + getv("cv_bn_b")
    x = x + linear(swish(bn), "cv_w2", "cv_b2")            # Dropout(p=0) = id

    # ---- FeedForwardModule #2 ----
    x = x + 0.5 * linear(swish(linear(x, "ff2_w1", "ff2_b1")), "ff2_w2", "ff2_b2")

    # ---- Final LayerNorm ----
    o_ref[...] = layernorm(x, "fin_ln_g", "fin_ln_b")


# ---------------- wrapper-side parameter packing ----------------
def _attention_masks(S):
    HS = NUM_HEADS * S
    head_of_c = jnp.arange(D, dtype=jnp.int32) // HEAD_DIM        # channel -> head
    col_head = jnp.arange(HS, dtype=jnp.int32) // S               # slab col -> head
    vmask = (col_head[:, None] == head_of_c[None, :]).astype(jnp.float32)   # [HS, D]
    blk = (col_head[:, None] == col_head[None, :]).astype(jnp.float32)      # [HS, HS]
    return vmask, blk


def _pack_slab(layout, entries, total, out_dtype):
    slab = jnp.zeros((total, SLAB_COLS), jnp.float32)
    tab, _ = _offsets(layout)
    for name, (r, c) in layout:
        off = tab[name][0]
        v = jnp.asarray(entries[name], jnp.float32).reshape(r, c)
        slab = slab.at[off:off + r, :c].set(v)
    return slab.astype(out_dtype)


def conformer_block(x, params):
    """x: [B, S, D] float32; params: dict of named arrays (see init_params)."""
    B, S, d = x.shape
    assert d == D
    HS = NUM_HEADS * S
    assert HS <= SLAB_COLS and 4 * D <= SLAB_COLS, "slab packing assumes H*S, 4D <= 128"
    M = B * S

    vmask, blk = _attention_masks(S)
    w_entries = dict(params); w_entries["att_blk"] = blk
    b_entries = dict(params); b_entries["mh_vmask"] = vmask

    w_layout = _w_layout(S)
    b_layout = _b_layout(S)
    _, w_rows = _offsets(w_layout)
    _, b_rows = _offsets(b_layout)
    w_slab = _pack_slab(w_layout, w_entries, w_rows, jnp.bfloat16)   # MXU operands
    b_slab = _pack_slab(b_layout, b_entries, b_rows, jnp.float32)    # taps/masks/biases

    # Advisory cost estimate for the XLA scheduler around the fused call.
    matmul_flops = 2 * M * (2 * (D * H_FF + H_FF * D)      # two FFNs
                            + D * 3 * D + D * D            # qkv + out proj
                            + D * 4 * D + C_EXP * D)       # conv pointwise 1 & 2
    attn_flops = 2 * M * HS * D * 2 + 2 * M * HS * HS      # scores + ctx + denom
    conv_flops = 2 * M * C_EXP * K_SIZE
    transcendentals = M * (2 * H_FF + 2 * C_EXP + HS)
    bytes_accessed = int(x.size * 4 + w_slab.size * 2 + b_slab.size * 4 + M * D * 4)

    vspec = pl.BlockSpec(memory_space=pltpu.MemorySpace.VMEM)
    # TODO(synk): for large B*S add a batch/M grid with
    # dimension_semantics=("parallel",) so both v7x TensorCores are used,
    # re-derive the tile budget for v7x's 64 MiB VMEM, split BatchNorm into a
    # separate sum/sumsq stats pass so batch statistics stay exact across
    # tiles, and replace the O(S^3) block-diag softmax-denominator trick with a
    # per-head (flash-style) path; also make the output store lane-dense
    # ((M*D/128, 128)) once gridded — at 4 KiB it is negligible here.
    return pl.pallas_call(
        conformer_kernel,
        out_shape=jax.ShapeDtypeStruct((B, S, D), jnp.float32),
        in_specs=[vspec, vspec, vspec],
        out_specs=vspec,
        cost_estimate=pl.CostEstimate(
            flops=int(matmul_flops + attn_flops + conv_flops),
            transcendentals=int(transcendentals),
            bytes_accessed=bytes_accessed),
    )(x, w_slab, b_slab)


# ---------------- deterministic parameter init ----------------
def init_params(key):
    ks = jax.random.split(key, 18)

    def w(k, shape, scale=0.05):
        return (scale * jax.random.normal(k, shape)).astype(jnp.float32)

    ones = lambda n: jnp.ones((n,), jnp.float32)
    zeros = lambda n: jnp.zeros((n,), jnp.float32)

    return {
        # FFN 1
        "ff1_w1": w(ks[0], (D, H_FF)), "ff1_b1": w(ks[1], (H_FF,)),
        "ff1_w2": w(ks[2], (H_FF, D)), "ff1_b2": w(ks[3], (D,)),
        # MHSA: LayerNorm, qkv in-proj, out-proj
        "mh_ln_g": ones(D), "mh_ln_b": zeros(D),
        "mh_wqkv": w(ks[4], (D, 3 * D)), "mh_bqkv": w(ks[5], (3 * D,)),
        "mh_wo": w(ks[6], (D, D)), "mh_bo": w(ks[7], (D,)),
        # ConvModule: LayerNorm, pointwise1 (D->4D), depthwise (K x 2D),
        # BatchNorm gamma/beta, pointwise2 (2D->D)
        "cv_ln_g": ones(D), "cv_ln_b": zeros(D),
        "cv_w1": w(ks[8], (D, 4 * D)), "cv_b1": w(ks[9], (4 * D,)),
        "cv_wdw": w(ks[10], (K_SIZE, C_EXP)), "cv_bdw": w(ks[11], (C_EXP,)),
        "cv_bn_g": ones(C_EXP), "cv_bn_b": zeros(C_EXP),
        "cv_w2": w(ks[12], (C_EXP, D)), "cv_b2": w(ks[13], (D,)),
        # FFN 2
        "ff2_w1": w(ks[14], (D, H_FF)), "ff2_b1": w(ks[15], (H_FF,)),
        "ff2_w2": w(ks[16], (H_FF, D)), "ff2_b2": w(ks[17], (D,)),
        # Final LayerNorm
        "fin_ln_g": ones(D), "fin_ln_b": zeros(D),
    }


if __name__ == "__main__":
    key = jax.random.PRNGKey(0)
    kx, kp = jax.random.split(key)
    B, S = 2, 16
    x = jax.random.normal(kx, (B, S, D), jnp.float32)
    params = init_params(kp)

    out = conformer_block(x, params)
    jax.block_until_ready(out)

    assert out.shape == (B, S, D), out.shape
    assert bool(jnp.all(jnp.isfinite(out)))
    print("KERNEL_OK")
</pallas_src>

<mosaic_0001>
module attributes {stable_mosaic.version = 11 : i64} {
  func.func @conformer_kernel(%arg0: memref<2x16x32xf32, #tpu.memory_space<vmem>>, %arg1: memref<416x128xbf16, #tpu.memory_space<vmem>>, %arg2: memref<120x128xf32, #tpu.memory_space<vmem>>, %arg3: memref<2x16x32xf32, #tpu.memory_space<vmem>>) attributes {dimension_semantics = [], scalar_prefetch = 0 : i64, scratch_operands = 0 : i64, tpu.core_type = #tpu.core_type<tc>} {
    %c0 = arith.constant 0 : index
    %c0_0 = arith.constant 0 : index
    %c0_1 = arith.constant 0 : index
    %0 = vector.load %arg0[%c0, %c0_0, %c0_1] : memref<2x16x32xf32, #tpu.memory_space<vmem>>, vector<2x16x32xf32>
    %c0_2 = arith.constant 0 : index
    %c0_3 = arith.constant 0 : index
    %1 = vector.load %arg1[%c0_2, %c0_3] : memref<416x128xbf16, #tpu.memory_space<vmem>>, vector<32x64xbf16>
    %2 = vector.shape_cast %0 : vector<2x16x32xf32> to vector<32x32xf32>
    %3 = arith.truncf %2 : vector<32x32xf32> to vector<32x32xbf16>
    %cst = arith.constant dense<0.000000e+00> : vector<32x64xf32>
    %4 = tpu.matmul %3, %1, %cst {dimension_numbers = #tpu.dot_dimension_numbers<[1], [0], [0], [1], [0, 0, 1, 1], [], []>} : vector<32x32xbf16>, vector<32x64xbf16>, vector<32x64xf32> -> vector<32x64xf32>
    %c96 = arith.constant 96 : index
    %c0_4 = arith.constant 0 : index
    %5 = vector.load %arg2[%c96, %c0_4] : memref<120x128xf32, #tpu.memory_space<vmem>>, vector<1x64xf32>
    %6 = vector.broadcast %5 : vector<1x64xf32> to vector<32x64xf32>
    %7 = arith.addf %4, %6 : vector<32x64xf32>
    %8 = vector.shape_cast %7 : vector<32x64xf32> to vector<2x16x64xf32>
    %9 = arith.negf %8 : vector<2x16x64xf32>
    %10 = math.exp %9 : vector<2x16x64xf32>
    %cst_5 = arith.constant 1.000000e+00 : f32
    %11 = vector.broadcast %cst_5 : f32 to vector<2x16x64xf32>
    %12 = arith.addf %11, %10 : vector<2x16x64xf32>
    %13 = arith.divf %11, %12 : vector<2x16x64xf32>
    %14 = arith.mulf %8, %13 : vector<2x16x64xf32>
    %c32 = arith.constant 32 : index
    %c0_6 = arith.constant 0 : index
    %15 = vector.load %arg1[%c32, %c0_6] : memref<416x128xbf16, #tpu.memory_space<vmem>>, vector<64x32xbf16>
    %16 = vector.shape_cast %14 : vector<2x16x64xf32> to vector<32x64xf32>
    %17 = arith.truncf %16 : vector<32x64xf32> to vector<32x64xbf16>
    %cst_7 = arith.constant dense<0.000000e+00> : vector<32x32xf32>
    %18 = tpu.matmul %17, %15, %cst_7 {dimension_numbers = #tpu.dot_dimension_numbers<[1], [0], [0], [1], [0, 0, 1, 1], [], []>} : vector<32x64xbf16>, vector<64x32xbf16>, vector<32x32xf32> -> vector<32x32xf32>
    %c97 = arith.constant 97 : index
    %c0_8 = arith.constant 0 : index
    %19 = vector.load %arg2[%c97, %c0_8] : memref<120x128xf32, #tpu.memory_space<vmem>>, vector<1x32xf32>
    %20 = vector.broadcast %19 : vector<1x32xf32> to vector<32x32xf32>
    %21 = arith.addf %18, %20 : vector<32x32xf32>
    %22 = vector.shape_cast %21 : vector<32x32xf32> to vector<2x16x32xf32>
    %cst_9 = arith.constant 5.000000e-01 : f32
    %23 = vector.broadcast %cst_9 : f32 to vector<2x16x32xf32>
    %24 = arith.mulf %23, %22 : vector<2x16x32xf32>
    %25 = arith.addf %0, %24 : vector<2x16x32xf32>
    %cst_10 = arith.constant dense<0.000000e+00> : vector<2x16xf32>
    %26 = vector.multi_reduction <add>, %25, %cst_10 [2] : vector<2x16x32xf32> to vector<2x16xf32>
    %27 = vector.shape_cast %26 : vector<2x16xf32> to vector<2x16x1xf32>
    %cst_11 = arith.constant 3.200000e+01 : f32
    %28 = vector.broadcast %cst_11 : f32 to vector<2x16x1xf32>
    %29 = arith.divf %27, %28 : vector<2x16x1xf32>
    %30 = vector.broadcast %29 : vector<2x16x1xf32> to vector<2x16x32xf32>
    %31 = arith.subf %25, %30 : vector<2x16x32xf32>
    %32 = arith.mulf %31, %31 : vector<2x16x32xf32>
    %cst_12 = arith.constant dense<0.000000e+00> : vector<2x16xf32>
    %33 = vector.multi_reduction <add>, %32, %cst_12 [2] : vector<2x16x32xf32> to vector<2x16xf32>
    %34 = vector.shape_cast %33 : vector<2x16xf32> to vector<2x16x1xf32>
    %cst_13 = arith.constant 3.200000e+01 : f32
    %35 = vector.broadcast %cst_13 : f32 to vector<2x16x1xf32>
    %36 = arith.divf %34, %35 : vector<2x16x1xf32>
    %37 = vector.broadcast %29 : vector<2x16x1xf32> to vector<2x16x32xf32>
    %38 = arith.subf %25, %37 : vector<2x16x32xf32>
    %cst_14 = arith.constant 9.99999974E-6 : f32
    %39 = vector.broadcast %cst_14 : f32 to vector<2x16x1xf32>
    %40 = arith.addf %36, %39 : vector<2x16x1xf32>
    %41 = math.rsqrt %40 : vector<2x16x1xf32>
    %42 = vector.broadcast %41 : vector<2x16x1xf32> to vector<2x16x32xf32>
    %43 = arith.mulf %38, %42 : vector<2x16x32xf32>
    %c98 = arith.constant 98 : index
    %c0_15 = arith.constant 0 : index
    %44 = vector.load %arg2[%c98, %c0_15] : memref<120x128xf32, #tpu.memory_space<vmem>>, vector<1x32xf32>
    %45 = vector.shape_cast %44 : vector<1x32xf32> to vector<1x1x32xf32>
    %46 = vector.broadcast %45 : vector<1x1x32xf32> to vector<2x16x32xf32>
    %47 = arith.mulf %43, %46 : vector<2x16x32xf32>
    %c99 = arith.constant 99 : index
    %c0_16 = arith.constant 0 : index
    %48 = vector.load %arg2[%c99, %c0_16] : memref<120x128xf32, #tpu.memory_space<vmem>>, vector<1x32xf32>
    %49 = vector.shape_cast %48 : vector<1x32xf32> to vector<1x1x32xf32>
    %50 = vector.broadcast %49 : vector<1x1x32xf32> to vector<2x16x32xf32>
    %51 = arith.addf %47, %50 : vector<2x16x32xf32>
    %c96_17 = arith.constant 96 : index
    %c0_18 = arith.constant 0 : index
    %52 = vector.load %arg1[%c96_17, %c0_18] : memref<416x128xbf16, #tpu.memory_space<vmem>>, vector<32x96xbf16>
    %53 = vector.shape_cast %51 : vector<2x16x32xf32> to vector<32x32xf32>
    %54 = arith.truncf %53 : vector<32x32xf32> to vector<32x32xbf16>
    %cst_19 = arith.constant dense<0.000000e+00> : vector<32x96xf32>
    %55 = tpu.matmul %54, %52, %cst_19 {dimension_numbers = #tpu.dot_dimension_numbers<[1], [0], [0], [1], [0, 0, 1, 1], [], []>} : vector<32x32xbf16>, vector<32x96xbf16>, vector<32x96xf32> -> vector<32x96xf32>
    %c100 = arith.constant 100 : index
    %c0_20 = arith.constant 0 : index
    %56 = vector.load %arg2[%c100, %c0_20] : memref<120x128xf32, #tpu.memory_space<vmem>>, vector<1x96xf32>
    %57 = vector.broadcast %56 : vector<1x96xf32> to vector<32x96xf32>
    %58 = arith.addf %55, %57 : vector<32x96xf32>
    %59 = vector.shape_cast %58 : vector<32x96xf32> to vector<2x16x96xf32>
    %60 = vector.extract_strided_slice %59 {offsets = [0, 0, 0], sizes = [2, 16, 32], strides = [1, 1, 1]} : vector<2x16x96xf32> to vector<2x16x32xf32>
    %cst_21 = arith.constant 0.353553385 : f32
    %61 = vector.broadcast %cst_21 : f32 to vector<2x16x32xf32>
    %62 = arith.mulf %60, %61 : vector<2x16x32xf32>
    %63 = vector.extract_strided_slice %59 {offsets = [0, 0, 32], sizes = [2, 16, 32], strides = [1, 1, 1]} : vector<2x16x96xf32> to vector<2x16x32xf32>
    %64 = vector.extract_strided_slice %59 {offsets = [0, 0, 64], sizes = [2, 16, 32], strides = [1, 1, 1]} : vector<2x16x96xf32> to vector<2x16x32xf32>
    %c32_22 = arith.constant 32 : index
    %c0_23 = arith.constant 0 : index
    %65 = vector.load %arg2[%c32_22, %c0_23] : memref<120x128xf32, #tpu.memory_space<vmem>>, vector<64x32xf32>
    %66 = tpu.concatenate %63, %63, %63, %63 in 1 : vector<2x16x32xf32>, vector<2x16x32xf32>, vector<2x16x32xf32>, vector<2x16x32xf32> -> vector<2x64x32xf32>
    %67 = vector.shape_cast %65 : vector<64x32xf32> to vector<1x64x32xf32>
    %68 = vector.broadcast %67 : vector<1x64x32xf32> to vector<2x64x32xf32>
    %69 = arith.mulf %66, %68 : vector<2x64x32xf32>
    %70 = tpu.concatenate %64, %64, %64, %64 in 1 : vector<2x16x32xf32>, vector<2x16x32xf32>, vector<2x16x32xf32>, vector<2x16x32xf32> -> vector<2x64x32xf32>
    %71 = vector.shape_cast %65 : vector<64x32xf32> to vector<1x64x32xf32>
    %72 = vector.broadcast %71 : vector<1x64x32xf32> to vector<2x64x32xf32>
    %73 = arith.mulf %70, %72 : vector<2x64x32xf32>
    %74 = arith.truncf %62 : vector<2x16x32xf32> to vector<2x16x32xbf16>
    %75 = arith.truncf %69 : vector<2x64x32xf32> to vector<2x64x32xbf16>
    "tpu.trace_start"() <{level = 10 : i32, message = "bqc,bmc->bqm"}> : () -> ()
    %cst_24 = arith.constant dense<0.000000e+00> : vector<2x16x64xf32>
    %76 = tpu.matmul %74, %75, %cst_24 {dimension_numbers = #tpu.dot_dimension_numbers<[2], [2], [1], [1], [0, 0, 0, 1, 1, 1], [0], [0]>} : vector<2x16x32xbf16>, vector<2x64x32xbf16>, vector<2x16x64xf32> -> vector<2x16x64xf32>
    "tpu.trace_stop"() : () -> ()
    %cst_25 = arith.constant dense<0xFF800000> : vector<2x16xf32>
    %77 = vector.multi_reduction <maximumf>, %76, %cst_25 [2] : vector<2x16x64xf32> to vector<2x16xf32>
    %78 = vector.shape_cast %77 : vector<2x16xf32> to vector<2x16x1xf32>
    %79 = vector.broadcast %78 : vector<2x16x1xf32> to vector<2x16x64xf32>
    %80 = arith.subf %76, %79 : vector<2x16x64xf32>
    %81 = math.exp %80 : vector<2x16x64xf32>
    %82 = vector.shape_cast %81 : vector<2x16x64xf32> to vector<32x64xf32>
    %83 = arith.truncf %82 : vector<32x64xf32> to vector<32x64xbf16>
    %c352 = arith.constant 352 : index
    %c0_26 = arith.constant 0 : index
    %84 = vector.load %arg1[%c352, %c0_26] : memref<416x128xbf16, #tpu.memory_space<vmem>>, vector<64x64xbf16>
    %cst_27 = arith.constant dense<0.000000e+00> : vector<32x64xf32>
    %85 = tpu.matmul %83, %84, %cst_27 {dimension_numbers = #tpu.dot_dimension_numbers<[1], [0], [0], [1], [0, 0, 1, 1], [], []>} : vector<32x64xbf16>, vector<64x64xbf16>, vector<32x64xf32> -> vector<32x64xf32>
    %86 = vector.shape_cast %85 : vector<32x64xf32> to vector<2x16x64xf32>
    %cst_28 = arith.constant 9.99999968E-21 : f32
    %87 = vector.broadcast %cst_28 : f32 to vector<2x16x64xf32>
    %88 = arith.addf %86, %87 : vector<2x16x64xf32>
    %89 = tpu.reciprocal %88 {approx = true} : vector<2x16x64xf32> -> vector<2x16x64xf32>
    %90 = arith.mulf %81, %89 : vector<2x16x64xf32>
    %91 = arith.truncf %90 : vector<2x16x64xf32> to vector<2x16x64xbf16>
    %92 = arith.truncf %73 : vector<2x64x32xf32> to vector<2x64x32xbf16>
    "tpu.trace_start"() <{level = 10 : i32, message = "bqm,bmc->bqc"}> : () -> ()
    %cst_29 = arith.constant dense<0.000000e+00> : vector<2x16x32xf32>
    %93 = tpu.matmul %91, %92, %cst_29 {dimension_numbers = #tpu.dot_dimension_numbers<[2], [1], [1], [2], [0, 0, 0, 1, 1, 2], [0], [0]>} : vector<2x16x64xbf16>, vector<2x64x32xbf16>, vector<2x16x32xf32> -> vector<2x16x32xf32>
    "tpu.trace_stop"() : () -> ()
    %c128 = arith.constant 128 : index
    %c0_30 = arith.constant 0 : index
    %94 = vector.load %arg1[%c128, %c0_30] : memref<416x128xbf16, #tpu.memory_space<vmem>>, vector<32x32xbf16>
    %95 = vector.shape_cast %93 : vector<2x16x32xf32> to vector<32x32xf32>
    %96 = arith.truncf %95 : vector<32x32xf32> to vector<32x32xbf16>
    %cst_31 = arith.constant dense<0.000000e+00> : vector<32x32xf32>
    %97 = tpu.matmul %96, %94, %cst_31 {dimension_numbers = #tpu.dot_dimension_numbers<[1], [0], [0], [1], [0, 0, 1, 1], [], []>} : vector<32x32xbf16>, vector<32x32xbf16>, vector<32x32xf32> -> vector<32x32xf32>
    %c101 = arith.constant 101 : index
    %c0_32 = arith.constant 0 : index
    %98 = vector.load %arg2[%c101, %c0_32] : memref<120x128xf32, #tpu.memory_space<vmem>>, vector<1x32xf32>
    %99 = vector.broadcast %98 : vector<1x32xf32> to vector<32x32xf32>
    %100 = arith.addf %97, %99 : vector<32x32xf32>
    %101 = vector.shape_cast %100 : vector<32x32xf32> to vector<2x16x32xf32>
    %102 = arith.addf %25, %101 : vector<2x16x32xf32>
    %cst_33 = arith.constant dense<0.000000e+00> : vector<2x16xf32>
    %103 = vector.multi_reduction <add>, %102, %cst_33 [2] : vector<2x16x32xf32> to vector<2x16xf32>
    %104 = vector.shape_cast %103 : vector<2x16xf32> to vector<2x16x1xf32>
    %cst_34 = arith.constant 3.200000e+01 : f32
    %105 = vector.broadcast %cst_34 : f32 to vector<2x16x1xf32>
    %106 = arith.divf %104, %105 : vector<2x16x1xf32>
    %107 = vector.broadcast %106 : vector<2x16x1xf32> to vector<2x16x32xf32>
    %108 = arith.subf %102, %107 : vector<2x16x32xf32>
    %109 = arith.mulf %108, %108 : vector<2x16x32xf32>
    %cst_35 = arith.constant dense<0.000000e+00> : vector<2x16xf32>
    %110 = vector.multi_reduction <add>, %109, %cst_35 [2] : vector<2x16x32xf32> to vector<2x16xf32>
    %111 = vector.shape_cast %110 : vector<2x16xf32> to vector<2x16x1xf32>
    %cst_36 = arith.constant 3.200000e+01 : f32
    %112 = vector.broadcast %cst_36 : f32 to vector<2x16x1xf32>
    %113 = arith.divf %111, %112 : vector<2x16x1xf32>
    %114 = vector.broadcast %106 : vector<2x16x1xf32> to vector<2x16x32xf32>
    %115 = arith.subf %102, %114 : vector<2x16x32xf32>
    %cst_37 = arith.constant 9.99999974E-6 : f32
    %116 = vector.broadcast %cst_37 : f32 to vector<2x16x1xf32>
    %117 = arith.addf %113, %116 : vector<2x16x1xf32>
    %118 = math.rsqrt %117 : vector<2x16x1xf32>
    %119 = vector.broadcast %118 : vector<2x16x1xf32> to vector<2x16x32xf32>
    %120 = arith.mulf %115, %119 : vector<2x16x32xf32>
    %c102 = arith.constant 102 : index
    %c0_38 = arith.constant 0 : index
    %121 = vector.load %arg2[%c102, %c0_38] : memref<120x128xf32, #tpu.memory_space<vmem>>, vector<1x32xf32>
    %122 = vector.shape_cast %121 : vector<1x32xf32> to vector<1x1x32xf32>
    %123 = vector.broadcast %122 : vector<1x1x32xf32> to vector<2x16x32xf32>
    %124 = arith.mulf %120, %123 : vector<2x16x32xf32>
    %c103 = arith.constant 103 : index
    %c0_39 = arith.constant 0 : index
    %125 = vector.load %arg2[%c103, %c0_39] : memref<120x128xf32, #tpu.memory_space<vmem>>, vector<1x32xf32>
    %126 = vector.shape_cast %125 : vector<1x32xf32> to vector<1x1x32xf32>
    %127 = vector.broadcast %126 : vector<1x1x32xf32> to vector<2x16x32xf32>
    %128 = arith.addf %124, %127 : vector<2x16x32xf32>
    %c160 = arith.constant 160 : index
    %c0_40 = arith.constant 0 : index
    %129 = vector.load %arg1[%c160, %c0_40] : memref<416x128xbf16, #tpu.memory_space<vmem>>, vector<32x128xbf16>
    %130 = vector.shape_cast %128 : vector<2x16x32xf32> to vector<32x32xf32>
    %131 = arith.truncf %130 : vector<32x32xf32> to vector<32x32xbf16>
    %cst_41 = arith.constant dense<0.000000e+00> : vector<32x128xf32>
    %132 = tpu.matmul %131, %129, %cst_41 {dimension_numbers = #tpu.dot_dimension_numbers<[1], [0], [0], [1], [0, 0, 1, 1], [], []>} : vector<32x32xbf16>, vector<32x128xbf16>, vector<32x128xf32> -> vector<32x128xf32>
    %c104 = arith.constant 104 : index
    %c0_42 = arith.constant 0 : index
    %133 = vector.load %arg2[%c104, %c0_42] : memref<120x128xf32, #tpu.memory_space<vmem>>, vector<1x128xf32>
    %134 = vector.broadcast %133 : vector<1x128xf32> to vector<32x128xf32>
    %135 = arith.addf %132, %134 : vector<32x128xf32>
    %136 = vector.shape_cast %135 : vector<32x128xf32> to vector<2x16x128xf32>
    %137 = vector.extract_strided_slice %136 {offsets = [0, 0, 0], sizes = [2, 16, 64], strides = [1, 1, 1]} : vector<2x16x128xf32> to vector<2x16x64xf32>
    %138 = vector.extract_strided_slice %136 {offsets = [0, 0, 64], sizes = [2, 16, 64], strides = [1, 1, 1]} : vector<2x16x128xf32> to vector<2x16x64xf32>
    %139 = arith.negf %138 : vector<2x16x64xf32>
    %140 = math.exp %139 : vector<2x16x64xf32>
    %cst_43 = arith.constant 1.000000e+00 : f32
    %141 = vector.broadcast %cst_43 : f32 to vector<2x16x64xf32>
    %142 = arith.addf %141, %140 : vector<2x16x64xf32>
    %143 = arith.divf %141, %142 : vector<2x16x64xf32>
    %144 = arith.mulf %137, %143 : vector<2x16x64xf32>
    %cst_44 = arith.constant 0.000000e+00 : f32
    %145 = vector.broadcast %cst_44 : f32 to vector<2x16x64xf32>
    %146 = tpu.concatenate %145, %144, %145 in 1 : vector<2x16x64xf32>, vector<2x16x64xf32>, vector<2x16x64xf32> -> vector<2x48x64xf32>
    %c7 = arith.constant 7 : index
    %c0_45 = arith.constant 0 : index
    %147 = vector.load %arg2[%c7, %c0_45] : memref<120x128xf32, #tpu.memory_space<vmem>>, vector<1x64xf32>
    %148 = vector.extract_strided_slice %146 {offsets = [0, 8, 0], sizes = [2, 16, 64], strides = [1, 1, 1]} : vector<2x48x64xf32> to vector<2x16x64xf32>
    %149 = vector.shape_cast %147 : vector<1x64xf32> to vector<1x1x64xf32>
    %150 = vector.broadcast %149 : vector<1x1x64xf32> to vector<2x16x64xf32>
    %151 = arith.mulf %148, %150 : vector<2x16x64xf32>
    %c15 = arith.constant 15 : index
    %c0_46 = arith.constant 0 : index
    %152 = vector.load %arg2[%c15, %c0_46] : memref<120x128xf32, #tpu.memory_space<vmem>>, vector<1x64xf32>
    %153 = vector.extract_strided_slice %146 {offsets = [0, 16, 0], sizes = [2, 16, 64], strides = [1, 1, 1]} : vector<2x48x64xf32> to vector<2x16x64xf32>
    %154 = vector.shape_cast %152 : vector<1x64xf32> to vector<1x1x64xf32>
    %155 = vector.broadcast %154 : vector<1x1x64xf32> to vector<2x16x64xf32>
    %156 = arith.mulf %153, %155 : vector<2x16x64xf32>
    %157 = arith.addf %151, %156 : vector<2x16x64xf32>
    %c23 = arith.constant 23 : index
    %c0_47 = arith.constant 0 : index
    %158 = vector.load %arg2[%c23, %c0_47] : memref<120x128xf32, #tpu.memory_space<vmem>>, vector<1x64xf32>
    %159 = vector.extract_strided_slice %146 {offsets = [0, 24, 0], sizes = [2, 16, 64], strides = [1, 1, 1]} : vector<2x48x64xf32> to vector<2x16x64xf32>
    %160 = vector.shape_cast %158 : vector<1x64xf32> to vector<1x1x64xf32>
    %161 = vector.broadcast %160 : vector<1x1x64xf32> to vector<2x16x64xf32>
    %162 = arith.mulf %159, %161 : vector<2x16x64xf32>
    %163 = arith.addf %157, %162 : vector<2x16x64xf32>
    %c47_i32 = arith.constant 47 : i32
    %164 = tpu.dynamic_rotate %146 by %c47_i32 dim 1 : vector<2x48x64xf32>, i32 -> vector<2x48x64xf32>
    %c0_48 = arith.constant 0 : index
    %c0_49 = arith.constant 0 : index
    %165 = vector.load %arg2[%c0_48, %c0_49] : memref<120x128xf32, #tpu.memory_space<vmem>>, vector<1x64xf32>
    %166 = vector.extract_strided_slice %164 {offsets = [0, 0, 0], sizes = [2, 16, 64], strides = [1, 1, 1]} : vector<2x48x64xf32> to vector<2x16x64xf32>
    %167 = vector.shape_cast %165 : vector<1x64xf32> to vector<1x1x64xf32>
    %168 = vector.broadcast %167 : vector<1x1x64xf32> to vector<2x16x64xf32>
    %169 = arith.mulf %166, %168 : vector<2x16x64xf32>
    %170 = arith.addf %163, %169 : vector<2x16x64xf32>
    %c8 = arith.constant 8 : index
    %c0_50 = arith.constant 0 : index
    %171 = vector.load %arg2[%c8, %c0_50] : memref<120x128xf32, #tpu.memory_space<vmem>>, vector<1x64xf32>
    %172 = vector.extract_strided_slice %164 {offsets = [0, 8, 0], sizes = [2, 16, 64], strides = [1, 1, 1]} : vector<2x48x64xf32> to vector<2x16x64xf32>
    %173 = vector.shape_cast %171 : vector<1x64xf32> to vector<1x1x64xf32>
    %174 = vector.broadcast %173 : vector<1x1x64xf32> to vector<2x16x64xf32>
    %175 = arith.mulf %172, %174 : vector<2x16x64xf32>
    %176 = arith.addf %170, %175 : vector<2x16x64xf32>
    %c16 = arith.constant 16 : index
    %c0_51 = arith.constant 0 : index
    %177 = vector.load %arg2[%c16, %c0_51] : memref<120x128xf32, #tpu.memory_space<vmem>>, vector<1x64xf32>
    %178 = vector.extract_strided_slice %164 {offsets = [0, 16, 0], sizes = [2, 16, 64], strides = [1, 1, 1]} : vector<2x48x64xf32> to vector<2x16x64xf32>
    %179 = vector.shape_cast %177 : vector<1x64xf32> to vector<1x1x64xf32>
    %180 = vector.broadcast %179 : vector<1x1x64xf32> to vector<2x16x64xf32>
    %181 = arith.mulf %178, %180 : vector<2x16x64xf32>
    %182 = arith.addf %176, %181 : vector<2x16x64xf32>
    %c24 = arith.constant 24 : index
    %c0_52 = arith.constant 0 : index
    %183 = vector.load %arg2[%c24, %c0_52] : memref<120x128xf32, #tpu.memory_space<vmem>>, vector<1x64xf32>
    %184 = vector.extract_strided_slice %164 {offsets = [0, 24, 0], sizes = [2, 16, 64], strides = [1, 1, 1]} : vector<2x48x64xf32> to vector<2x16x64xf32>
    %185 = vector.shape_cast %183 : vector<1x64xf32> to vector<1x1x64xf32>
    %186 = vector.broadcast %185 : vector<1x1x64xf32> to vector<2x16x64xf32>
    %187 = arith.mulf %184, %186 : vector<2x16x64xf32>
    %188 = arith.addf %182, %187 : vector<2x16x64xf32>
    %c47_i32_53 = arith.constant 47 : i32
    %189 = tpu.dynamic_rotate %164 by %c47_i32_53 dim 1 : vector<2x48x64xf32>, i32 -> vector<2x48x64xf32>
    %c1 = arith.constant 1 : index
    %c0_54 = arith.constant 0 : index
    %190 = vector.load %arg2[%c1, %c0_54] : memref<120x128xf32, #tpu.memory_space<vmem>>, vector<1x64xf32>
    %191 = vector.extract_strided_slice %189 {offsets = [0, 0, 0], sizes = [2, 16, 64], strides = [1, 1, 1]} : vector<2x48x64xf32> to vector<2x16x64xf32>
    %192 = vector.shape_cast %190 : vector<1x64xf32> to vector<1x1x64xf32>
    %193 = vector.broadcast %192 : vector<1x1x64xf32> to vector<2x16x64xf32>
    %194 = arith.mulf %191, %193 : vector<2x16x64xf32>
    %195 = arith.addf %188, %194 : vector<2x16x64xf32>
    %c9 = arith.constant 9 : index
    %c0_55 = arith.constant 0 : index
    %196 = vector.load %arg2[%c9, %c0_55] : memref<120x128xf32, #tpu.memory_space<vmem>>, vector<1x64xf32>
    %197 = vector.extract_strided_slice %189 {offsets = [0, 8, 0], sizes = [2, 16, 64], strides = [1, 1, 1]} : vector<2x48x64xf32> to vector<2x16x64xf32>
    %198 = vector.shape_cast %196 : vector<1x64xf32> to vector<1x1x64xf32>
    %199 = vector.broadcast %198 : vector<1x1x64xf32> to vector<2x16x64xf32>
    %200 = arith.mulf %197, %199 : vector<2x16x64xf32>
    %201 = arith.addf %195, %200 : vector<2x16x64xf32>
    %c17 = arith.constant 17 : index
    %c0_56 = arith.constant 0 : index
    %202 = vector.load %arg2[%c17, %c0_56] : memref<120x128xf32, #tpu.memory_space<vmem>>, vector<1x64xf32>
    %203 = vector.extract_strided_slice %189 {offsets = [0, 16, 0], sizes = [2, 16, 64], strides = [1, 1, 1]} : vector<2x48x64xf32> to vector<2x16x64xf32>
    %204 = vector.shape_cast %202 : vector<1x64xf32> to vector<1x1x64xf32>
    %205 = vector.broadcast %204 : vector<1x1x64xf32> to vector<2x16x64xf32>
    %206 = arith.mulf %203, %205 : vector<2x16x64xf32>
    %207 = arith.addf %201, %206 : vector<2x16x64xf32>
    %c25 = arith.constant 25 : index
    %c0_57 = arith.constant 0 : index
    %208 = vector.load %arg2[%c25, %c0_57] : memref<120x128xf32, #tpu.memory_space<vmem>>, vector<1x64xf32>
    %209 = vector.extract_strided_slice %189 {offsets = [0, 24, 0], sizes = [2, 16, 64], strides = [1, 1, 1]} : vector<2x48x64xf32> to vector<2x16x64xf32>
    %210 = vector.shape_cast %208 : vector<1x64xf32> to vector<1x1x64xf32>
    %211 = vector.broadcast %210 : vector<1x1x64xf32> to vector<2x16x64xf32>
    %212 = arith.mulf %209, %211 : vector<2x16x64xf32>
    %213 = arith.addf %207, %212 : vector<2x16x64xf32>
    %c47_i32_58 = arith.constant 47 : i32
    %214 = tpu.dynamic_rotate %189 by %c47_i32_58 dim 1 : vector<2x48x64xf32>, i32 -> vector<2x48x64xf32>
    %c2 = arith.constant 2 : index
    %c0_59 = arith.constant 0 : index
    %215 = vector.load %arg2[%c2, %c0_59] : memref<120x128xf32, #tpu.memory_space<vmem>>, vector<1x64xf32>
    %216 = vector.extract_strided_slice %214 {offsets = [0, 0, 0], sizes = [2, 16, 64], strides = [1, 1, 1]} : vector<2x48x64xf32> to vector<2x16x64xf32>
    %217 = vector.shape_cast %215 : vector<1x64xf32> to vector<1x1x64xf32>
    %218 = vector.broadcast %217 : vector<1x1x64xf32> to vector<2x16x64xf32>
    %219 = arith.mulf %216, %218 : vector<2x16x64xf32>
    %220 = arith.addf %213, %219 : vector<2x16x64xf32>
    %c10 = arith.constant 10 : index
    %c0_60 = arith.constant 0 : index
    %221 = vector.load %arg2[%c10, %c0_60] : memref<120x128xf32, #tpu.memory_space<vmem>>, vector<1x64xf32>
    %222 = vector.extract_strided_slice %214 {offsets = [0, 8, 0], sizes = [2, 16, 64], strides = [1, 1, 1]} : vector<2x48x64xf32> to vector<2x16x64xf32>
    %223 = vector.shape_cast %221 : vector<1x64xf32> to vector<1x1x64xf32>
    %224 = vector.broadcast %223 : vector<1x1x64xf32> to vector<2x16x64xf32>
    %225 = arith.mulf %222, %224 : vector<2x16x64xf32>
    %226 = arith.addf %220, %225 : vector<2x16x64xf32>
    %c18 = arith.constant 18 : index
    %c0_61 = arith.constant 0 : index
    %227 = vector.load %arg2[%c18, %c0_61] : memref<120x128xf32, #tpu.memory_space<vmem>>, vector<1x64xf32>
    %228 = vector.extract_strided_slice %214 {offsets = [0, 16, 0], sizes = [2, 16, 64], strides = [1, 1, 1]} : vector<2x48x64xf32> to vector<2x16x64xf32>
    %229 = vector.shape_cast %227 : vector<1x64xf32> to vector<1x1x64xf32>
    %230 = vector.broadcast %229 : vector<1x1x64xf32> to vector<2x16x64xf32>
    %231 = arith.mulf %228, %230 : vector<2x16x64xf32>
    %232 = arith.addf %226, %231 : vector<2x16x64xf32>
    %c26 = arith.constant 26 : index
    %c0_62 = arith.constant 0 : index
    %233 = vector.load %arg2[%c26, %c0_62] : memref<120x128xf32, #tpu.memory_space<vmem>>, vector<1x64xf32>
    %234 = vector.extract_strided_slice %214 {offsets = [0, 24, 0], sizes = [2, 16, 64], strides = [1, 1, 1]} : vector<2x48x64xf32> to vector<2x16x64xf32>
    %235 = vector.shape_cast %233 : vector<1x64xf32> to vector<1x1x64xf32>
    %236 = vector.broadcast %235 : vector<1x1x64xf32> to vector<2x16x64xf32>
    %237 = arith.mulf %234, %236 : vector<2x16x64xf32>
    %238 = arith.addf %232, %237 : vector<2x16x64xf32>
    %c47_i32_63 = arith.constant 47 : i32
    %239 = tpu.dynamic_rotate %214 by %c47_i32_63 dim 1 : vector<2x48x64xf32>, i32 -> vector<2x48x64xf32>
    %c3 = arith.constant 3 : index
    %c0_64 = arith.constant 0 : index
    %240 = vector.load %arg2[%c3, %c0_64] : memref<120x128xf32, #tpu.memory_space<vmem>>, vector<1x64xf32>
    %241 = vector.extract_strided_slice %239 {offsets = [0, 0, 0], sizes = [2, 16, 64], strides = [1, 1, 1]} : vector<2x48x64xf32> to vector<2x16x64xf32>
    %242 = vector.shape_cast %240 : vector<1x64xf32> to vector<1x1x64xf32>
    %243 = vector.broadcast %242 : vector<1x1x64xf32> to vector<2x16x64xf32>
    %244 = arith.mulf %241, %243 : vector<2x16x64xf32>
    %245 = arith.addf %238, %244 : vector<2x16x64xf32>
    %c11 = arith.constant 11 : index
    %c0_65 = arith.constant 0 : index
    %246 = vector.load %arg2[%c11, %c0_65] : memref<120x128xf32, #tpu.memory_space<vmem>>, vector<1x64xf32>
    %247 = vector.extract_strided_slice %239 {offsets = [0, 8, 0], sizes = [2, 16, 64], strides = [1, 1, 1]} : vector<2x48x64xf32> to vector<2x16x64xf32>
    %248 = vector.shape_cast %246 : vector<1x64xf32> to vector<1x1x64xf32>
    %249 = vector.broadcast %248 : vector<1x1x64xf32> to vector<2x16x64xf32>
    %250 = arith.mulf %247, %249 : vector<2x16x64xf32>
    %251 = arith.addf %245, %250 : vector<2x16x64xf32>
    %c19 = arith.constant 19 : index
    %c0_66 = arith.constant 0 : index
    %252 = vector.load %arg2[%c19, %c0_66] : memref<120x128xf32, #tpu.memory_space<vmem>>, vector<1x64xf32>
    %253 = vector.extract_strided_slice %239 {offsets = [0, 16, 0], sizes = [2, 16, 64], strides = [1, 1, 1]} : vector<2x48x64xf32> to vector<2x16x64xf32>
    %254 = vector.shape_cast %252 : vector<1x64xf32> to vector<1x1x64xf32>
    %255 = vector.broadcast %254 : vector<1x1x64xf32> to vector<2x16x64xf32>
    %256 = arith.mulf %253, %255 : vector<2x16x64xf32>
    %257 = arith.addf %251, %256 : vector<2x16x64xf32>
    %c27 = arith.constant 27 : index
    %c0_67 = arith.constant 0 : index
    %258 = vector.load %arg2[%c27, %c0_67] : memref<120x128xf32, #tpu.memory_space<vmem>>, vector<1x64xf32>
    %259 = vector.extract_strided_slice %239 {offsets = [0, 24, 0], sizes = [2, 16, 64], strides = [1, 1, 1]} : vector<2x48x64xf32> to vector<2x16x64xf32>
    %260 = vector.shape_cast %258 : vector<1x64xf32> to vector<1x1x64xf32>
    %261 = vector.broadcast %260 : vector<1x1x64xf32> to vector<2x16x64xf32>
    %262 = arith.mulf %259, %261 : vector<2x16x64xf32>
    %263 = arith.addf %257, %262 : vector<2x16x64xf32>
    %c47_i32_68 = arith.constant 47 : i32
    %264 = tpu.dynamic_rotate %239 by %c47_i32_68 dim 1 : vector<2x48x64xf32>, i32 -> vector<2x48x64xf32>
    %c4 = arith.constant 4 : index
    %c0_69 = arith.constant 0 : index
    %265 = vector.load %arg2[%c4, %c0_69] : memref<120x128xf32, #tpu.memory_space<vmem>>, vector<1x64xf32>
    %266 = vector.extract_strided_slice %264 {offsets = [0, 0, 0], sizes = [2, 16, 64], strides = [1, 1, 1]} : vector<2x48x64xf32> to vector<2x16x64xf32>
    %267 = vector.shape_cast %265 : vector<1x64xf32> to vector<1x1x64xf32>
    %268 = vector.broadcast %267 : vector<1x1x64xf32> to vector<2x16x64xf32>
    %269 = arith.mulf %266, %268 : vector<2x16x64xf32>
    %270 = arith.addf %263, %269 : vector<2x16x64xf32>
    %c12 = arith.constant 12 : index
    %c0_70 = arith.constant 0 : index
    %271 = vector.load %arg2[%c12, %c0_70] : memref<120x128xf32, #tpu.memory_space<vmem>>, vector<1x64xf32>
    %272 = vector.extract_strided_slice %264 {offsets = [0, 8, 0], sizes = [2, 16, 64], strides = [1, 1, 1]} : vector<2x48x64xf32> to vector<2x16x64xf32>
    %273 = vector.shape_cast %271 : vector<1x64xf32> to vector<1x1x64xf32>
    %274 = vector.broadcast %273 : vector<1x1x64xf32> to vector<2x16x64xf32>
    %275 = arith.mulf %272, %274 : vector<2x16x64xf32>
    %276 = arith.addf %270, %275 : vector<2x16x64xf32>
    %c20 = arith.constant 20 : index
    %c0_71 = arith.constant 0 : index
    %277 = vector.load %arg2[%c20, %c0_71] : memref<120x128xf32, #tpu.memory_space<vmem>>, vector<1x64xf32>
    %278 = vector.extract_strided_slice %264 {offsets = [0, 16, 0], sizes = [2, 16, 64], strides = [1, 1, 1]} : vector<2x48x64xf32> to vector<2x16x64xf32>
    %279 = vector.shape_cast %277 : vector<1x64xf32> to vector<1x1x64xf32>
    %280 = vector.broadcast %279 : vector<1x1x64xf32> to vector<2x16x64xf32>
    %281 = arith.mulf %278, %280 : vector<2x16x64xf32>
    %282 = arith.addf %276, %281 : vector<2x16x64xf32>
    %c28 = arith.constant 28 : index
    %c0_72 = arith.constant 0 : index
    %283 = vector.load %arg2[%c28, %c0_72] : memref<120x128xf32, #tpu.memory_space<vmem>>, vector<1x64xf32>
    %284 = vector.extract_strided_slice %264 {offsets = [0, 24, 0], sizes = [2, 16, 64], strides = [1, 1, 1]} : vector<2x48x64xf32> to vector<2x16x64xf32>
    %285 = vector.shape_cast %283 : vector<1x64xf32> to vector<1x1x64xf32>
    %286 = vector.broadcast %285 : vector<1x1x64xf32> to vector<2x16x64xf32>
    %287 = arith.mulf %284, %286 : vector<2x16x64xf32>
    %288 = arith.addf %282, %287 : vector<2x16x64xf32>
    %c47_i32_73 = arith.constant 47 : i32
    %289 = tpu.dynamic_rotate %264 by %c47_i32_73 dim 1 : vector<2x48x64xf32>, i32 -> vector<2x48x64xf32>
    %c5 = arith.constant 5 : index
    %c0_74 = arith.constant 0 : index
    %290 = vector.load %arg2[%c5, %c0_74] : memref<120x128xf32, #tpu.memory_space<vmem>>, vector<1x64xf32>
    %291 = vector.extract_strided_slice %289 {offsets = [0, 0, 0], sizes = [2, 16, 64], strides = [1, 1, 1]} : vector<2x48x64xf32> to vector<2x16x64xf32>
    %292 = vector.shape_cast %290 : vector<1x64xf32> to vector<1x1x64xf32>
    %293 = vector.broadcast %292 : vector<1x1x64xf32> to vector<2x16x64xf32>
    %294 = arith.mulf %291, %293 : vector<2x16x64xf32>
    %295 = arith.addf %288, %294 : vector<2x16x64xf32>
    %c13 = arith.constant 13 : index
    %c0_75 = arith.constant 0 : index
    %296 = vector.load %arg2[%c13, %c0_75] : memref<120x128xf32, #tpu.memory_space<vmem>>, vector<1x64xf32>
    %297 = vector.extract_strided_slice %289 {offsets = [0, 8, 0], sizes = [2, 16, 64], strides = [1, 1, 1]} : vector<2x48x64xf32> to vector<2x16x64xf32>
    %298 = vector.shape_cast %296 : vector<1x64xf32> to vector<1x1x64xf32>
    %299 = vector.broadcast %298 : vector<1x1x64xf32> to vector<2x16x64xf32>
    %300 = arith.mulf %297, %299 : vector<2x16x64xf32>
    %301 = arith.addf %295, %300 : vector<2x16x64xf32>
    %c21 = arith.constant 21 : index
    %c0_76 = arith.constant 0 : index
    %302 = vector.load %arg2[%c21, %c0_76] : memref<120x128xf32, #tpu.memory_space<vmem>>, vector<1x64xf32>
    %303 = vector.extract_strided_slice %289 {offsets = [0, 16, 0], sizes = [2, 16, 64], strides = [1, 1, 1]} : vector<2x48x64xf32> to vector<2x16x64xf32>
    %304 = vector.shape_cast %302 : vector<1x64xf32> to vector<1x1x64xf32>
    %305 = vector.broadcast %304 : vector<1x1x64xf32> to vector<2x16x64xf32>
    %306 = arith.mulf %303, %305 : vector<2x16x64xf32>
    %307 = arith.addf %301, %306 : vector<2x16x64xf32>
    %c29 = arith.constant 29 : index
    %c0_77 = arith.constant 0 : index
    %308 = vector.load %arg2[%c29, %c0_77] : memref<120x128xf32, #tpu.memory_space<vmem>>, vector<1x64xf32>
    %309 = vector.extract_strided_slice %289 {offsets = [0, 24, 0], sizes = [2, 16, 64], strides = [1, 1, 1]} : vector<2x48x64xf32> to vector<2x16x64xf32>
    %310 = vector.shape_cast %308 : vector<1x64xf32> to vector<1x1x64xf32>
    %311 = vector.broadcast %310 : vector<1x1x64xf32> to vector<2x16x64xf32>
    %312 = arith.mulf %309, %311 : vector<2x16x64xf32>
    %313 = arith.addf %307, %312 : vector<2x16x64xf32>
    %c47_i32_78 = arith.constant 47 : i32
    %314 = tpu.dynamic_rotate %289 by %c47_i32_78 dim 1 : vector<2x48x64xf32>, i32 -> vector<2x48x64xf32>
    %c6 = arith.constant 6 : index
    %c0_79 = arith.constant 0 : index
    %315 = vector.load %arg2[%c6, %c0_79] : memref<120x128xf32, #tpu.memory_space<vmem>>, vector<1x64xf32>
    %316 = vector.extract_strided_slice %314 {offsets = [0, 0, 0], sizes = [2, 16, 64], strides = [1, 1, 1]} : vector<2x48x64xf32> to vector<2x16x64xf32>
    %317 = vector.shape_cast %315 : vector<1x64xf32> to vector<1x1x64xf32>
    %318 = vector.broadcast %317 : vector<1x1x64xf32> to vector<2x16x64xf32>
    %319 = arith.mulf %316, %318 : vector<2x16x64xf32>
    %320 = arith.addf %313, %319 : vector<2x16x64xf32>
    %c14 = arith.constant 14 : index
    %c0_80 = arith.constant 0 : index
    %321 = vector.load %arg2[%c14, %c0_80] : memref<120x128xf32, #tpu.memory_space<vmem>>, vector<1x64xf32>
    %322 = vector.extract_strided_slice %314 {offsets = [0, 8, 0], sizes = [2, 16, 64], strides = [1, 1, 1]} : vector<2x48x64xf32> to vector<2x16x64xf32>
    %323 = vector.shape_cast %321 : vector<1x64xf32> to vector<1x1x64xf32>
    %324 = vector.broadcast %323 : vector<1x1x64xf32> to vector<2x16x64xf32>
    %325 = arith.mulf %322, %324 : vector<2x16x64xf32>
    %326 = arith.addf %320, %325 : vector<2x16x64xf32>
    %c22 = arith.constant 22 : index
    %c0_81 = arith.constant 0 : index
    %327 = vector.load %arg2[%c22, %c0_81] : memref<120x128xf32, #tpu.memory_space<vmem>>, vector<1x64xf32>
    %328 = vector.extract_strided_slice %314 {offsets = [0, 16, 0], sizes = [2, 16, 64], strides = [1, 1, 1]} : vector<2x48x64xf32> to vector<2x16x64xf32>
    %329 = vector.shape_cast %327 : vector<1x64xf32> to vector<1x1x64xf32>
    %330 = vector.broadcast %329 : vector<1x1x64xf32> to vector<2x16x64xf32>
    %331 = arith.mulf %328, %330 : vector<2x16x64xf32>
    %332 = arith.addf %326, %331 : vector<2x16x64xf32>
    %c30 = arith.constant 30 : index
    %c0_82 = arith.constant 0 : index
    %333 = vector.load %arg2[%c30, %c0_82] : memref<120x128xf32, #tpu.memory_space<vmem>>, vector<1x64xf32>
    %334 = vector.extract_strided_slice %314 {offsets = [0, 24, 0], sizes = [2, 16, 64], strides = [1, 1, 1]} : vector<2x48x64xf32> to vector<2x16x64xf32>
    %335 = vector.shape_cast %333 : vector<1x64xf32> to vector<1x1x64xf32>
    %336 = vector.broadcast %335 : vector<1x1x64xf32> to vector<2x16x64xf32>
    %337 = arith.mulf %334, %336 : vector<2x16x64xf32>
    %338 = arith.addf %332, %337 : vector<2x16x64xf32>
    %c105 = arith.constant 105 : index
    %c0_83 = arith.constant 0 : index
    %339 = vector.load %arg2[%c105, %c0_83] : memref<120x128xf32, #tpu.memory_space<vmem>>, vector<1x64xf32>
    %340 = vector.shape_cast %339 : vector<1x64xf32> to vector<1x1x64xf32>
    %341 = vector.broadcast %340 : vector<1x1x64xf32> to vector<2x16x64xf32>
    %342 = arith.addf %338, %341 : vector<2x16x64xf32>
    %cst_84 = arith.constant dense<0.000000e+00> : vector<64xf32>
    %343 = vector.multi_reduction <add>, %342, %cst_84 [0, 1] : vector<2x16x64xf32> to vector<64xf32>
    %344 = vector.shape_cast %343 : vector<64xf32> to vector<1x1x64xf32>
    %cst_85 = arith.constant 3.200000e+01 : f32
    %345 = vector.broadcast %cst_85 : f32 to vector<1x1x64xf32>
    %346 = arith.divf %344, %345 : vector<1x1x64xf32>
    %347 = vector.broadcast %346 : vector<1x1x64xf32> to vector<2x16x64xf32>
    %348 = arith.subf %342, %347 : vector<2x16x64xf32>
    %349 = arith.mulf %348, %348 : vector<2x16x64xf32>
    %cst_86 = arith.constant dense<0.000000e+00> : vector<64xf32>
    %350 = vector.multi_reduction <add>, %349, %cst_86 [0, 1] : vector<2x16x64xf32> to vector<64xf32>
    %351 = vector.shape_cast %350 : vector<64xf32> to vector<1x1x64xf32>
    %cst_87 = arith.constant 3.200000e+01 : f32
    %352 = vector.broadcast %cst_87 : f32 to vector<1x1x64xf32>
    %353 = arith.divf %351, %352 : vector<1x1x64xf32>
    %354 = vector.broadcast %346 : vector<1x1x64xf32> to vector<2x16x64xf32>
    %355 = arith.subf %342, %354 : vector<2x16x64xf32>
    %cst_88 = arith.constant 9.99999974E-6 : f32
    %356 = vector.broadcast %cst_88 : f32 to vector<1x1x64xf32>
    %357 = arith.addf %353, %356 : vector<1x1x64xf32>
    %358 = math.rsqrt %357 : vector<1x1x64xf32>
    %359 = vector.broadcast %358 : vector<1x1x64xf32> to vector<2x16x64xf32>
    %360 = arith.mulf %355, %359 : vector<2x16x64xf32>
    %c106 = arith.constant 106 : index
    %c0_89 = arith.constant 0 : index
    %361 = vector.load %arg2[%c106, %c0_89] : memref<120x128xf32, #tpu.memory_space<vmem>>, vector<1x64xf32>
    %362 = vector.shape_cast %361 : vector<1x64xf32> to vector<1x1x64xf32>
    %363 = vector.broadcast %362 : vector<1x1x64xf32> to vector<2x16x64xf32>
    %364 = arith.mulf %360, %363 : vector<2x16x64xf32>
    %c107 = arith.constant 107 : index
    %c0_90 = arith.constant 0 : index
    %365 = vector.load %arg2[%c107, %c0_90] : memref<120x128xf32, #tpu.memory_space<vmem>>, vector<1x64xf32>
    %366 = vector.shape_cast %365 : vector<1x64xf32> to vector<1x1x64xf32>
    %367 = vector.broadcast %366 : vector<1x1x64xf32> to vector<2x16x64xf32>
    %368 = arith.addf %364, %367 : vector<2x16x64xf32>
    %369 = arith.negf %368 : vector<2x16x64xf32>
    %370 = math.exp %369 : vector<2x16x64xf32>
    %cst_91 = arith.constant 1.000000e+00 : f32
    %371 = vector.broadcast %cst_91 : f32 to vector<2x16x64xf32>
    %372 = arith.addf %371, %370 : vector<2x16x64xf32>
    %373 = arith.divf %371, %372 : vector<2x16x64xf32>
    %374 = arith.mulf %368, %373 : vector<2x16x64xf32>
    %c192 = arith.constant 192 : index
    %c0_92 = arith.constant 0 : index
    %375 = vector.load %arg1[%c192, %c0_92] : memref<416x128xbf16, #tpu.memory_space<vmem>>, vector<64x32xbf16>
    %376 = vector.shape_cast %374 : vector<2x16x64xf32> to vector<32x64xf32>
    %377 = arith.truncf %376 : vector<32x64xf32> to vector<32x64xbf16>
    %cst_93 = arith.constant dense<0.000000e+00> : vector<32x32xf32>
    %378 = tpu.matmul %377, %375, %cst_93 {dimension_numbers = #tpu.dot_dimension_numbers<[1], [0], [0], [1], [0, 0, 1, 1], [], []>} : vector<32x64xbf16>, vector<64x32xbf16>, vector<32x32xf32> -> vector<32x32xf32>
    %c108 = arith.constant 108 : index
    %c0_94 = arith.constant 0 : index
    %379 = vector.load %arg2[%c108, %c0_94] : memref<120x128xf32, #tpu.memory_space<vmem>>, vector<1x32xf32>
    %380 = vector.broadcast %379 : vector<1x32xf32> to vector<32x32xf32>
    %381 = arith.addf %378, %380 : vector<32x32xf32>
    %382 = vector.shape_cast %381 : vector<32x32xf32> to vector<2x16x32xf32>
    %383 = arith.addf %102, %382 : vector<2x16x32xf32>
    %c256 = arith.constant 256 : index
    %c0_95 = arith.constant 0 : index
    %384 = vector.load %arg1[%c256, %c0_95] : memref<416x128xbf16, #tpu.memory_space<vmem>>, vector<32x64xbf16>
    %385 = vector.shape_cast %383 : vector<2x16x32xf32> to vector<32x32xf32>
    %386 = arith.truncf %385 : vector<32x32xf32> to vector<32x32xbf16>
    %cst_96 = arith.constant dense<0.000000e+00> : vector<32x64xf32>
    %387 = tpu.matmul %386, %384, %cst_96 {dimension_numbers = #tpu.dot_dimension_numbers<[1], [0], [0], [1], [0, 0, 1, 1], [], []>} : vector<32x32xbf16>, vector<32x64xbf16>, vector<32x64xf32> -> vector<32x64xf32>
    %c109 = arith.constant 109 : index
    %c0_97 = arith.constant 0 : index
    %388 = vector.load %arg2[%c109, %c0_97] : memref<120x128xf32, #tpu.memory_space<vmem>>, vector<1x64xf32>
    %389 = vector.broadcast %388 : vector<1x64xf32> to vector<32x64xf32>
    %390 = arith.addf %387, %389 : vector<32x64xf32>
    %391 = vector.shape_cast %390 : vector<32x64xf32> to vector<2x16x64xf32>
    %392 = arith.negf %391 : vector<2x16x64xf32>
    %393 = math.exp %392 : vector<2x16x64xf32>
    %cst_98 = arith.constant 1.000000e+00 : f32
    %394 = vector.broadcast %cst_98 : f32 to vector<2x16x64xf32>
    %395 = arith.addf %394, %393 : vector<2x16x64xf32>
    %396 = arith.divf %394, %395 : vector<2x16x64xf32>
    %397 = arith.mulf %391, %396 : vector<2x16x64xf32>
    %c288 = arith.constant 288 : index
    %c0_99 = arith.constant 0 : index
    %398 = vector.load %arg1[%c288, %c0_99] : memref<416x128xbf16, #tpu.memory_space<vmem>>, vector<64x32xbf16>
    %399 = vector.shape_cast %397 : vector<2x16x64xf32> to vector<32x64xf32>
    %400 = arith.truncf %399 : vector<32x64xf32> to vector<32x64xbf16>
    %cst_100 = arith.constant dense<0.000000e+00> : vector<32x32xf32>
    %401 = tpu.matmul %400, %398, %cst_100 {dimension_numbers = #tpu.dot_dimension_numbers<[1], [0], [0], [1], [0, 0, 1, 1], [], []>} : vector<32x64xbf16>, vector<64x32xbf16>, vector<32x32xf32> -> vector<32x32xf32>
    %c110 = arith.constant 110 : index
    %c0_101 = arith.constant 0 : index
    %402 = vector.load %arg2[%c110, %c0_101] : memref<120x128xf32, #tpu.memory_space<vmem>>, vector<1x32xf32>
    %403 = vector.broadcast %402 : vector<1x32xf32> to vector<32x32xf32>
    %404 = arith.addf %401, %403 : vector<32x32xf32>
    %405 = vector.shape_cast %404 : vector<32x32xf32> to vector<2x16x32xf32>
    %cst_102 = arith.constant 5.000000e-01 : f32
    %406 = vector.broadcast %cst_102 : f32 to vector<2x16x32xf32>
    %407 = arith.mulf %406, %405 : vector<2x16x32xf32>
    %408 = arith.addf %383, %407 : vector<2x16x32xf32>
    %cst_103 = arith.constant dense<0.000000e+00> : vector<2x16xf32>
    %409 = vector.multi_reduction <add>, %408, %cst_103 [2] : vector<2x16x32xf32> to vector<2x16xf32>
    %410 = vector.shape_cast %409 : vector<2x16xf32> to vector<2x16x1xf32>
    %cst_104 = arith.constant 3.200000e+01 : f32
    %411 = vector.broadcast %cst_104 : f32 to vector<2x16x1xf32>
    %412 = arith.divf %410, %411 : vector<2x16x1xf32>
    %413 = vector.broadcast %412 : vector<2x16x1xf32> to vector<2x16x32xf32>
    %414 = arith.subf %408, %413 : vector<2x16x32xf32>
    %415 = arith.mulf %414, %414 : vector<2x16x32xf32>
    %cst_105 = arith.constant dense<0.000000e+00> : vector<2x16xf32>
    %416 = vector.multi_reduction <add>, %415, %cst_105 [2] : vector<2x16x32xf32> to vector<2x16xf32>
    %417 = vector.shape_cast %416 : vector<2x16xf32> to vector<2x16x1xf32>
    %cst_106 = arith.constant 3.200000e+01 : f32
    %418 = vector.broadcast %cst_106 : f32 to vector<2x16x1xf32>
    %419 = arith.divf %417, %418 : vector<2x16x1xf32>
    %420 = vector.broadcast %412 : vector<2x16x1xf32> to vector<2x16x32xf32>
    %421 = arith.subf %408, %420 : vector<2x16x32xf32>
    %cst_107 = arith.constant 9.99999974E-6 : f32
    %422 = vector.broadcast %cst_107 : f32 to vector<2x16x1xf32>
    %423 = arith.addf %419, %422 : vector<2x16x1xf32>
    %424 = math.rsqrt %423 : vector<2x16x1xf32>
    %425 = vector.broadcast %424 : vector<2x16x1xf32> to vector<2x16x32xf32>
    %426 = arith.mulf %421, %425 : vector<2x16x32xf32>
    %c111 = arith.constant 111 : index
    %c0_108 = arith.constant 0 : index
    %427 = vector.load %arg2[%c111, %c0_108] : memref<120x128xf32, #tpu.memory_space<vmem>>, vector<1x32xf32>
    %428 = vector.shape_cast %427 : vector<1x32xf32> to vector<1x1x32xf32>
    %429 = vector.broadcast %428 : vector<1x1x32xf32> to vector<2x16x32xf32>
    %430 = arith.mulf %426, %429 : vector<2x16x32xf32>
    %c112 = arith.constant 112 : index
    %c0_109 = arith.constant 0 : index
    %431 = vector.load %arg2[%c112, %c0_109] : memref<120x128xf32, #tpu.memory_space<vmem>>, vector<1x32xf32>
    %432 = vector.shape_cast %431 : vector<1x32xf32> to vector<1x1x32xf32>
    %433 = vector.broadcast %432 : vector<1x1x32xf32> to vector<2x16x32xf32>
    %434 = arith.addf %430, %433 : vector<2x16x32xf32>
    %c0_110 = arith.constant 0 : index
    %c0_111 = arith.constant 0 : index
    %c0_112 = arith.constant 0 : index
    %435 = vector.load %arg3[%c0_110, %c0_111, %c0_112] : memref<2x16x32xf32, #tpu.memory_space<vmem>>, vector<2x16x32xf32>
    tpu.vector_store %arg3[%c0_110, %c0_111, %c0_112], %434 {strides = array<i32>} : memref<2x16x32xf32, #tpu.memory_space<vmem>>, vector<2x16x32xf32>,
    return
  }
}

</mosaic_0001>

<bundles_post_ra>
// kernel: tpu_custom_call.1
= control target key start
LH: loop header
LB: loop body
LE: loop exit
PB: predicated region body
PF: predicated region fallthrough
CT: control target
= control target key end

     0   :  { %8 = vsyncpa [#allocation3], 0  ;;  %s3590_s0 = inlined_call_operand.hbm [shape: f32[2,16,32], index: 0, kind: input, shape index: {}]   ;;  %s3591_s1 = inlined_call_operand.hbm [shape: bf16[416,128], index: 1, kind: input, shape index: {}]   ;;  %s3592_s2 = inlined_call_operand.hbm [shape: f32[120,128], index: 2, kind: input, shape index: {}]   ;;  %s3593_s3 = inlined_call_operand.hbm [shape: f32[2,16,32], index: 3, kind: output, shape index: {}]  }
   0x1   :  { %9 = vsyncpa [#allocation6], 0 }
   0x2   :  { %10 = vsyncpa [#allocation4], 0  ;;  %s2770_s12 = smov [#allocation5]   ;;  %s2676_s16 = scalar_lea.hbm %s3591_s1, 3328 }
   0x3   :  { %s28_s13 = sshll.u32 %s2770_s12, 4  ;;  %p2677_p0 = scmp.ne.s32.totalorder %s3591_s1, %s2676_s16  ;;  %s29_s13 = int_to_ptr.vmem [resolvable:$true] %s28_s13 }
   0x4   :  { %p2680_p1 = scmp.lt.u32.totalorder %s2676_s16, %s3591_s1 }
   0x6   :  { %p2682_p2 = pnand %p2680_p1, %p2677_p0 }
   0x8   :  { %2685 = shalt.err (!%p2682_p2)
}
   0x9   :  { %s2686_s21 = scalar_lea.vmem %s29_s13, 3328  ;;  %p2691_p4 = scmp.lt.s32.totalorder %s29_s13, %s29_s13 }
   0xa   :  { %p2687_p3 = scmp.ne.s32.totalorder %s29_s13, %s2686_s21  ;;  %p2692_p5 = scmp.lt.s32.totalorder %s2686_s21, %s2686_s21 }
   0xc   :  { %p2693_p6 = por %p2692_p5, %p2691_p4 }
   0xe   :  { %p2694_p7 = pnand %p2693_p6, %p2687_p3 }
  0x10   :  { %2697 = shalt.err (!%p2694_p7)
}
  0x11   :  { %s2771_s22 = smov 64   ;;  %s2772_s23 = smov 4  }
  0x12   :  { %34 = dma.hbm_to_vmem [thread:$0]  %s3591_s1, 3328, %s29_s13, [#allocation6], %s2771_s22, %s2771_s22, %s2772_s23  }
  0x13   :  { %s2773_s26 = smov [#allocation2]   ;;  %s2698_s30 = scalar_lea.hbm %s3590_s0, 512 }
  0x14   :  { %s16_s27 = sshll.u32 %s2773_s26, 4  ;;  %p2699_p8 = scmp.ne.s32.totalorder %s3590_s0, %s2698_s30  ;;  %s17_s27 = int_to_ptr.vmem [resolvable:$true] %s16_s27 }
  0x15   :  { %p2702_p9 = scmp.lt.u32.totalorder %s2698_s30, %s3590_s0 }
  0x17   :  { %p2704_p10 = pnand %p2702_p9, %p2699_p8 }
  0x19   :  { %2707 = shalt.err (!%p2704_p10)
}
  0x1a   :  { %s2708_s8 = scalar_lea.vmem %s17_s27, 512  ;;  %p2713_p12 = scmp.lt.s32.totalorder %s17_s27, %s17_s27 }
  0x1b   :  { %p2709_p11 = scmp.ne.s32.totalorder %s17_s27, %s2708_s8  ;;  %p2714_p13 = scmp.lt.s32.totalorder %s2708_s8, %s2708_s8 }
  0x1d   :  { %p2715_p0 = por %p2714_p13, %p2713_p12 }
  0x1f   :  { %p2716_p1 = pnand %p2715_p0, %p2709_p11 }
  0x21   :  { %2719 = shalt.err (!%p2716_p1)
}
  0x22   :  { %s2774_s1 = smov 128   ;;  %s2775_s9 = smov 8  }
  0x23   :  { %22 = dma.hbm_to_vmem [thread:$0]  %s3590_s0, 512, %s17_s27, [#allocation3], %s2774_s1, %s2774_s1, %s2775_s9  }
  0x24   :  { %s2776_s12 = smov [#allocation7]   ;;  %s2720_s16 = scalar_lea.hbm %s3592_s2, 1920 }
  0x25   :  { %s40_s13 = sshll.u32 %s2776_s12, 4  ;;  %p2721_p2 = scmp.ne.s32.totalorder %s3592_s2, %s2720_s16  ;;  %s41_s13 = int_to_ptr.vmem [resolvable:$true] %s40_s13 }
  0x26   :  { %p2724_p3 = scmp.lt.u32.totalorder %s2720_s16, %s3592_s2 }
  0x28   :  { %p2726_p4 = pnand %p2724_p3, %p2721_p2 }
  0x2a   :  { %2729 = shalt.err (!%p2726_p4)
}
  0x2b   :  { %s2730_s21 = scalar_lea.vmem %s41_s13, 1920  ;;  %p2735_p6 = scmp.lt.s32.totalorder %s41_s13, %s41_s13 }
  0x2c   :  { %p2731_p5 = scmp.ne.s32.totalorder %s41_s13, %s2730_s21  ;;  %p2736_p7 = scmp.lt.s32.totalorder %s2730_s21, %s2730_s21 }
  0x2e   :  { %p2737_p8 = por %p2736_p7, %p2735_p6 }
  0x30   :  { %p2738_p9 = pnand %p2737_p8, %p2731_p5 }
  0x32   :  { %2741 = shalt.err (!%p2738_p9)
}
  0x33   :  { %46 = dma.hbm_to_vmem [thread:$0]  %s3592_s2, 1920, %s41_s13, [#allocation6], %s2774_s1, %s2774_s1, %s2775_s9  }
  0x34   :  { %2764 = dma.done.wait [#allocation3], 512  }
  0x35   :  { %2765 = vsyncadd [#allocation3], 4294966784 }
  0x36   :  { %2766 = dma.done.wait [#allocation6], 5248  }
  0x37   :  { %2767 = vsyncadd [#allocation6], 4294962048  ;;  %v2544_v0 = vld [vmem:[#allocation5] sm:$0xff]   ;;  %v2545_v1 = vld [vmem:[#allocation5 + $0x8] sm:$0xff]   ;;  %vm84_vm0 = vcmask 261120   ;;  %vm207_vm1 = vcmask 523264  }
  0x38   :  { %2396 = vmatprep.subr.bf16.mxu0 %v2544_v0  ;;  %v2846_v2 = vld [vmem:[#allocation2] sm:$0xff]  ;;  %v2848_v3 = vld [vmem:[#allocation2 + $0x8] sm:$0xff]  ;;  %v2850_v4 = vld [vmem:[#allocation2 + $0x10] sm:$0xff]  ;;  %s2777_s2 = smov 32   ;;  %s2779_s24 = smov 96   ;;  %vm2780_vm2 = vmmov 0  }
  0x39   :  { %2397 = vmatpush3.bf16.msra.mxu0 %v2544_v0  ;;  %v65_v5 = vpack.c.bf16 %v2848_v3, %v2846_v2  ;;  %v2854_v6 = vld [vmem:[#allocation2 + $0x18] sm:$0xff]  ;;  %v2546_v8 = vld [vmem:[#allocation5 + $0x10] sm:$0xff]   ;;  %v2548_v10 = vld [vmem:[#allocation5 + $0x20] sm:$0xff]  }
  0x3a   :  { %2398 = vmatprep.subr.bf16.mxu0 %v2545_v1  ;;  %v66_v7 = vpack.c.bf16 %v2854_v6, %v2850_v4  ;;  %2404 = vmatprep.subr.bf16.mxu1 %v2546_v8  ;;  %v2547_v9 = vld [vmem:[#allocation5 + $0x18] sm:$0xff]   ;;  %v2549_v11 = vld [vmem:[#allocation5 + $0x28] sm:$0xff]   ;;  %v2220_v12 = vld [vmem:[#allocation7 + $0x60] ss:$0 sm:$0xff] }
  0x3b   :  { %2400 = vmatprep.mubr.msk.bf16.mxu0 %vm84_vm0, %v65_v5  ;;  %2405 = vmatpush3.bf16.msra.mxu1 %v2546_v8  ;;  %v2229_v43 = vld [vmem:[#allocation7 + $0x61] ss:$0 sm:$0xff] }
  0x3c   :  { %2406 = vmatprep.subr.bf16.mxu1 %v2547_v9 }
  0x3d   :  { %2399 = vmatpush3.bf16.msra.mxu0 %v2545_v1 }
  0x3f   :  { %2407 = vmatpush3.bf16.msra.mxu1 %v2547_v9 }
  0x40   :  { %2401 = vmatmul.mubr.msk.bf16.vlgmr.msra.gmra.mrb[0].mxu0 %vm84_vm0, %v66_v7  ;;  %2408 = vmatprep.subr.bf16.mxu1 %v2548_v10 }
  0x43   :  { %2409 = vmatpush3.bf16.msra.mxu1 %v2548_v10 }
  0x44   :  { %2410 = vmatprep.subr.bf16.mxu1 %v2549_v11 }
  0x47   :  { %2411 = vmatpush3.bf16.msra.mxu1 %v2549_v11 }
 0x113   :  { %v2402_v13 = vpop.f32.mrb[0].mxu0 }
 0x114   :  { %v134_v14 = vadd.f32 %v2402_v13, %v2220_v12  ;;  %v125_v15 = vpop.f32.mrb[1].mxu0 }
 0x115   :  { %v126_v16 = vadd.f32 %v2220_v12, %v125_v15  ;;  %v2403_v17 = vpop.f32.mrb[2].mxu0 }
 0x116   :  { %v2227_v18 = vmul.f32 -1.442695, %v134_v14  ;;  %v137_v19 = vadd.f32 %v2403_v17, %v2220_v12  ;;  %v128_v20 = vpop.f32.mrb[3].mxu0 }
 0x117   :  { %v2225_v21 = vmul.f32 -1.442695, %v126_v16  ;;  %v129_v22 = vadd.f32 %v2220_v12, %v128_v20  ;;  %v2550_v20 = vld [vmem:[#allocation5 + $0x30] sm:$0xff]  }
 0x118   :  { %2570 = vpow2.f32 %v2227_v18  ;;  %v2228_v23 = vmul.f32 -1.442695, %v137_v19  ;;  %2416 = vmatprep.subr.bf16.mxu0 %v2550_v20 }
 0x119   :  { %2572 = vpow2.f32 %v2225_v21  ;;  %v2226_v24 = vmul.f32 -1.442695, %v129_v22  ;;  %2417 = vmatpush3.bf16.msra.mxu0 %v2550_v20  ;;  %v2551_v21 = vld [vmem:[#allocation5 + $0x38] sm:$0xff]  }
 0x11a   :  { %2574 = vpow2.f32 %v2228_v23  ;;  %2418 = vmatprep.subr.bf16.mxu0 %v2551_v21  ;;  %v2900_v23 = vld [vmem:[#allocation7 + $0x20] sm:$0xff] }
 0x11b   :  { %2576 = vpow2.f32 %v2226_v24  ;;  %v2904_v24 = vld [vmem:[#allocation7 + $0x30] sm:$0xff] }
 0x11d   :  { %2419 = vmatpush3.bf16.msra.mxu0 %v2551_v21 }
 0x122   :  { %v2571_v25 = vpop.eup %2570 }
 0x123   :  { %v2573_v26 = vpop.eup %2572  ;;  %v154_v27 = vadd.f32 1.0, %v2571_v25  ;;  %v2906_v25 = vld [vmem:[#allocation7 + $0x40] sm:$0xff] }
 0x124   :  { %v2575_v28 = vpop.eup %2574  ;;  %v152_v29 = vadd.f32 1.0, %v2573_v26  ;;  %v2910_v26 = vld [vmem:[#allocation7 + $0x38] sm:$0xff] }
 0x125   :  { %v2577_v30 = vpop.eup %2576  ;;  %2578 = vrcp.f32 %v154_v27  ;;  %v155_v31 = vadd.f32 1.0, %v2575_v28  ;;  %v2912_v27 = vld [vmem:[#allocation7 + $0x50] sm:$0xff]  ;;  %v2916_v28 = vld [vmem:[#allocation7 + $0x48] sm:$0xff] }
 0x126   :  { %2580 = vrcp.f32 %v152_v29  ;;  %v153_v32 = vadd.f32 1.0, %v2577_v30  ;;  %v2919_v29 = vld [vmem:[#allocation7 + $0x58] sm:$0xff] }
 0x127   :  { %2582 = vrcp.f32 %v155_v31 }
 0x128   :  { %2584 = vrcp.f32 %v153_v32 }
 0x12f   :  { %v2579_v33 = vpop.eup %2578 }
 0x130   :  { %v2581_v34 = vpop.eup %2580  ;;  %v166_v37 = vmul.f32 %v2579_v33, %v134_v14 }
 0x131   :  { %v2583_v35 = vpop.eup %2582  ;;  %v164_v39 = vmul.f32 %v2581_v34, %v126_v16 }
 0x132   :  { %v2585_v36 = vpop.eup %2584  ;;  %v167_v38 = vmul.f32 %v2583_v35, %v137_v19 }
 0x133   :  { %v165_v40 = vmul.f32 %v2585_v36, %v129_v22  ;;  %v2898_v22 = vld [vmem:[#allocation7 + $0x28] sm:$0xff] }
 0x134   :  { %v177_v41 = vpack.c.bf16 %v167_v38, %v166_v37 }
 0x135   :  { %v176_v42 = vpack.c.bf16 %v165_v40, %v164_v39 }
 0x137   :  { %2412 = vmatprep.mubr.msk.bf16.mxu1 %vm207_vm1, %v176_v42 }
 0x138   :  { %2413 = vmatmul.mubr.msk.bf16.vlgmr.msra.gmra.mrb[0].mxu1 %vm207_vm1, %v177_v41 }
 0x20b   :  { %v2414_v44 = vpop.f32.mrb[0].mxu1 }
 0x20c   :  { %v257_v45 = vadd.f32 %v2414_v44, %v2229_v43  ;;  %v248_v46 = vpop.f32.mrb[1].mxu1  ;;  %v2236_v44 = vld [vmem:[#allocation7 + $0x62] ss:$0 sm:$0xff] }
 0x20d   :  { %v249_v47 = vadd.f32 %v2229_v43, %v248_v46  ;;  %v2415_v48 = vpop.f32.mrb[2].mxu1 }
 0x20e   :  { %v265_v49 = vmul.f32 0.5, %v257_v45  ;;  %v260_v50 = vadd.f32 %v2415_v48, %v2229_v43  ;;  %v251_v51 = vpop.f32.mrb[3].mxu1 }
 0x20f   :  { %v263_v52 = vmul.f32 0.5, %v249_v47  ;;  %v252_v53 = vadd.f32 %v2229_v43, %v251_v51 }
 0x210   :  { %v2863_v54 = vadd.f32 %v265_v49, %v2850_v4  ;;  %v266_v55 = vmul.f32 0.5, %v260_v50  ;;  %v2237_v50 = vld [vmem:[#allocation7 + $0x63] ss:$0 sm:$0xff] }
 0x211   :  { %v2866_v56 = vadd.f32 %v263_v52, %v2846_v2  ;;  %v264_v57 = vmul.f32 0.5, %v252_v53 }
 0x212   :  { %v2869_v58 = vadd.f32 %v266_v55, %v2854_v6  ;;  %v277_v59 = vsel %vm84_vm0, %v2863_v54, 0.0 }
 0x213   :  { %v2874_v60 = vadd.f32 %v264_v57, %v2848_v3  ;;  %278 = vadd.xlane.f32.xlu1 %v277_v59  ;;  %v271_v61 = vsel %vm84_vm0, %v2866_v56, 0.0 }
 0x214   :  { %272 = vadd.xlane.f32.xlu0 %v271_v61  ;;  %v280_v62 = vsel %vm84_vm0, %v2869_v58, 0.0 }
 0x215   :  { %v274_v63 = vsel %vm84_vm0, %v2874_v60, 0.0 }
 0x217   :  { %281 = vadd.xlane.f32.xlu1 %v280_v62 }
 0x218   :  { %275 = vadd.xlane.f32.xlu0 %v274_v63 }
 0x2a0   :  { %v279_v0 = vpop.xlane.xlu1 %278 }
 0x2a1   :  { %v286_v1 = vmul.f32 0.03125, %v279_v0  ;;  %v273_v2 = vpop.xlane.xlu0 %272 }
 0x2a2   :  { %v284_v4 = vmul.f32 0.03125, %v273_v2 }
 0x2a3   :  { %v2883_v3 = vsub.f32 %v2863_v54, %v286_v1 }
 0x2a4   :  { %v288_v5 = vsub.f32 %v2866_v56, %v284_v4  ;;  %v282_v6 = vpop.xlane.xlu1 %281 }
 0x2a5   :  { %v287_v7 = vmul.f32 0.03125, %v282_v6  ;;  %v276_v8 = vpop.xlane.xlu0 %275  ;;  %v294_v14 = vmul.f32 %v2883_v3, %v2883_v3 }
 0x2a6   :  { %v285_v9 = vmul.f32 0.03125, %v276_v8  ;;  %v292_v10 = vmul.f32 %v288_v5, %v288_v5 }
 0x2a7   :  { %v2887_v11 = vsub.f32 %v2869_v58, %v287_v7  ;;  %v302_v16 = vsel %vm84_vm0, %v294_v14, 0.0 }
 0x2a8   :  { %v289_v12 = vsub.f32 %v2874_v60, %v285_v9  ;;  %v296_v13 = vsel %vm84_vm0, %v292_v10, 0.0 }
 0x2a9   :  { %297 = vadd.xlane.f32.xlu0 %v296_v13  ;;  %v295_v18 = vmul.f32 %v2887_v11, %v2887_v11 }
 0x2aa   :  { %v293_v15 = vmul.f32 %v289_v12, %v289_v12 }
 0x2ab   :  { %v305_v19 = vsel %vm84_vm0, %v295_v18, 0.0 }
 0x2ac   :  { %v299_v17 = vsel %vm84_vm0, %v293_v15, 0.0 }
 0x2ad   :  { %303 = vadd.xlane.f32.xlu0 %v302_v16  ;;  %300 = vadd.xlane.f32.xlu1 %v299_v17 }
 0x2b1   :  { %306 = vadd.xlane.f32.xlu1 %v305_v19 }
 0x2c2   :  { %442 = vrot.lane.b32.xlu1 %v2898_v22, %s2777_s2 }
 0x2c3   :  { %440 = vrot.lane.b32.xlu0 %v2900_v23, %s2777_s2 }
 0x2c6   :  { %444 = vrot.lane.b32.xlu1 %v2904_v24, %s2777_s2 }
 0x2c7   :  { %448 = vrot.lane.b32.xlu0 %v2906_v25, %s2777_s2 }
 0x2ca   :  { %446 = vrot.lane.b32.xlu1 %v2910_v26, %s2777_s2 }
 0x2cb   :  { %452 = vrot.lane.b32.xlu0 %v2912_v27, %s2777_s2 }
 0x2ce   :  { %450 = vrot.lane.b32.xlu1 %v2916_v28, %s2777_s2 }
 0x2d2   :  { %454 = vrot.lane.b32.xlu1 %v2919_v29, %s2777_s2 }
 0x336   :  { %v298_v30 = vpop.xlane.xlu0 %297 }
 0x337   :  { %v308_v31 = vmul.f32 0.03125, %v298_v30 }
 0x339   :  { %v312_v32 = vadd.f32 1e-05, %v308_v31 }
 0x33a   :  { %v301_v33 = vpop.xlane.xlu1 %300  ;;  %v304_v34 = vpop.xlane.xlu0 %303 }
 0x33b   :  { %2586 = vrsqrt.f32 %v312_v32  ;;  %v309_v35 = vmul.f32 0.03125, %v301_v33  ;;  %v310_v36 = vmul.f32 0.03125, %v304_v34 }
 0x33d   :  { %v313_v37 = vadd.f32 1e-05, %v309_v35  ;;  %v314_v38 = vadd.f32 1e-05, %v310_v36 }
 0x33e   :  { %v307_v39 = vpop.xlane.xlu1 %306  ;;  %v441_v10 = vpop.permute.xlu0 %440 }
 0x33f   :  { %2588 = vrsqrt.f32 %v313_v37  ;;  %v311_v40 = vmul.f32 0.03125, %v307_v39 }
 0x340   :  { %2590 = vrsqrt.f32 %v314_v38 }
 0x341   :  { %v315_v41 = vadd.f32 1e-05, %v311_v40 }
 0x342   :  { %v443_v2 = vpop.permute.xlu1 %442  ;;  %v449_v31 = vpop.permute.xlu0 %448 }
 0x343   :  { %2592 = vrsqrt.f32 %v315_v41 }
 0x345   :  { %v2587_v42 = vpop.eup %2586 }
 0x346   :  { %v320_v43 = vmul.f32 %v2587_v42, %v288_v5  ;;  %v445_v4 = vpop.permute.xlu1 %444  ;;  %v2238_v5 = vld [vmem:[#allocation7 + $0x64] ss:$0 sm:$0xff]  ;;  %v453_v42 = vpop.permute.xlu0 %452 }
 0x348   :  { %v329_v48 = vmul.f32 %v2236_v44, %v320_v43 }
 0x349   :  { %v2589_v45 = vpop.eup %2588 }
 0x34a   :  { %v2591_v46 = vpop.eup %2590  ;;  %v321_v47 = vmul.f32 %v2589_v45, %v289_v12  ;;  %v338_v57 = vadd.f32 %v2237_v50, %v329_v48  ;;  %v447_v6 = vpop.permute.xlu1 %446 }
 0x34b   :  { %v322_v49 = vmul.f32 %v2591_v46, %v2883_v3  ;;  %v2778_v3 = vmov 0.0  }
 0x34c   :  { %v330_v51 = vmul.f32 %v2236_v44, %v321_v47  ;;  %2436 = vmatprep.subr.bf16.mxu1 %v2778_v3  ;;  %2424 = vmatprep.subr.bf16.mxu0 %v2778_v3 }
 0x34d   :  { %v2593_v52 = vpop.eup %2592  ;;  %v331_v53 = vmul.f32 %v2236_v44, %v322_v49  ;;  %2444 = vmatprep.mubr.msk.bf16.mxu1 %vm2780_vm2, %v2778_v3 }
 0x34e   :  { %v323_v55 = vmul.f32 %v2593_v52, %v2887_v11  ;;  %v339_v59 = vadd.f32 %v2237_v50, %v330_v51  ;;  %v451_v18 = vpop.permute.xlu1 %450 }
 0x34f   :  { %v340_v63 = vadd.f32 %v2237_v50, %v331_v53 }
 0x350   :  { %v332_v61 = vmul.f32 %v2236_v44, %v323_v55  ;;  %v346_v62 = vpack.c.bf16 %v339_v59, %v338_v57 }
 0x352   :  { %2420 = vmatprep.mubr.msk.bf16.mxu0 %vm84_vm0, %v346_v62  ;;  %v341_v0 = vadd.f32 %v2237_v50, %v332_v61  ;;  %v455_v38 = vpop.permute.xlu1 %454 }
 0x354   :  { %v347_v1 = vpack.c.bf16 %v341_v0, %v340_v63 }
 0x356   :  { %2421 = vmatmul.mubr.msk.bf16.vlgmr.msra.gmra.mrb[4].mxu0 %vm84_vm0, %v347_v1 }
 0x357   :  { %2432 = vmatprep.mubr.msk.bf16.mxu0 %vm2780_vm2, %v2778_v3 }
 0x429   :  { %v2422_v7 = vpop.f32.mrb[4].mxu0 }
 0x42a   :  { %v2928_v8 = vadd.f32 %v2422_v7, %v2238_v5  ;;  %v405_v9 = vpop.f32.mrb[5].mxu0 }
 0x42b   :  { %v2930_v11 = vadd.f32 %v2238_v5, %v405_v9  ;;  %v2423_v12 = vpop.f32.mrb[6].mxu0 }
 0x42c   :  { %v2932_v13 = vadd.f32 %v2423_v12, %v2238_v5  ;;  %v408_v14 = vpop.f32.mrb[7].mxu0  ;;  %v472_v16 = vmul.f32 %v441_v10, %v2928_v8  ;;  %v474_v34 = vmul.f32 %v445_v4, %v2928_v8  ;;  %v476_v41 = vmul.f32 %v449_v31, %v2928_v8 }
 0x42d   :  { %v2934_v15 = vadd.f32 %v2238_v5, %v408_v14  ;;  %v464_v19 = vmul.f32 %v441_v10, %v2930_v11  ;;  %v466_v35 = vmul.f32 %v445_v4, %v2930_v11  ;;  %v468_v43 = vmul.f32 %v449_v31, %v2930_v11 }
 0x42e   :  { %v473_v17 = vmul.f32 %v443_v2, %v2932_v13  ;;  %v475_v30 = vmul.f32 %v447_v6, %v2932_v13  ;;  %v477_v37 = vmul.f32 %v451_v18, %v2932_v13  ;;  %v479_v44 = vmul.f32 %v455_v38, %v2932_v13 }
 0x42f   :  { %v465_v20 = vmul.f32 %v443_v2, %v2934_v15  ;;  %v467_v33 = vmul.f32 %v447_v6, %v2934_v15  ;;  %v469_v40 = vmul.f32 %v451_v18, %v2934_v15  ;;  %v471_v46 = vmul.f32 %v455_v38, %v2934_v15 }
 0x430   :  { %v526_v21 = vpack.c.bf16 %v473_v17, %v472_v16  ;;  %v527_v36 = vpack.c.bf16 %v475_v30, %v474_v34  ;;  %v528_v45 = vpack.c.bf16 %v477_v37, %v476_v41  ;;  %v478_v48 = vmul.f32 %v453_v42, %v2928_v8  ;;  %v2554_v41 = vld [vmem:[#allocation5 + $0xc0] sm:$0xff]  }
 0x431   :  { %v522_v32 = vpack.c.bf16 %v465_v20, %v464_v19  ;;  %v523_v39 = vpack.c.bf16 %v467_v33, %v466_v35  ;;  %v524_v47 = vpack.c.bf16 %v469_v40, %v468_v43  ;;  %v470_v49 = vmul.f32 %v453_v42, %v2930_v11  ;;  %v2553_v40 = vld [vmem:[#allocation5 + $0xb8] sm:$0xff]  }
 0x432   :  { %602 = vrot.lane.b32.xlu1 %v526_v21, %s2779_s24  ;;  %v529_v50 = vpack.c.bf16 %v479_v44, %v478_v48  ;;  %v423_v10 = vmul.f32 0.35355338, %v2932_v13  ;;  %v421_v12 = vmul.f32 0.35355338, %v2934_v15  ;;  %v422_v14 = vmul.f32 0.35355338, %v2928_v8 }
 0x433   :  { %534 = vrot.lane.b32.xlu0 %v522_v32, %s2779_s24  ;;  %v525_v51 = vpack.c.bf16 %v471_v46, %v470_v49  ;;  %v420_v16 = vmul.f32 0.35355338, %v2930_v11 }
 0x434   :  { %v521_v17 = vpack.c.bf16 %v423_v10, %v422_v14 }
 0x435   :  { %v520_v18 = vpack.c.bf16 %v421_v12, %v420_v16 }
 0x436   :  { %604 = vrot.lane.b32.xlu1 %v527_v36, %s2779_s24 }
 0x437   :  { %536 = vrot.lane.b32.xlu0 %v523_v39, %s2779_s24  ;;  %v2552_v39 = vld [vmem:[#allocation5 + $0xb0] sm:$0xff]  }
 0x43a   :  { %606 = vrot.lane.b32.xlu1 %v528_v45, %s2779_s24 }
 0x43b   :  { %538 = vrot.lane.b32.xlu0 %v524_v47, %s2779_s24 }
 0x43e   :  { %608 = vrot.lane.b32.xlu1 %v529_v50, %s2779_s24 }
 0x43f   :  { %540 = vrot.lane.b32.xlu0 %v525_v51, %s2779_s24 }
 0x4a4   :  { %v603_v52 = vpop.permute.xlu1 %602 }
 0x4a5   :  { %v614_v53 = vsel %vm84_vm0, %v603_v52, 0  ;;  %v535_v55 = vpop.permute.xlu0 %534 }
 0x4a6   :  { %v546_v57 = vsel %vm84_vm0, %v535_v55, 0  ;;  %2437 = vmatpush3.bf16.xpose.msra.mxu1 %v614_v53 }
 0x4a7   :  { %2425 = vmatpush3.bf16.xpose.msra.mxu0 %v546_v57  ;;  %2438 = vmatprep.subr.bf16.mxu1 %v2778_v3 }
 0x4a8   :  { %2426 = vmatprep.subr.bf16.mxu0 %v2778_v3  ;;  %v605_v59 = vpop.permute.xlu1 %604 }
 0x4a9   :  { %v537_v61 = vpop.permute.xlu0 %536  ;;  %v617_v62 = vsel %vm84_vm0, %v605_v59, 0 }
 0x4aa   :  { %v549_v63 = vsel %vm84_vm0, %v537_v61, 0 }
 0x4ac   :  { %v607_v0 = vpop.permute.xlu1 %606 }
 0x4ad   :  { %v539_v1 = vpop.permute.xlu0 %538  ;;  %v620_v2 = vsel %vm84_vm0, %v607_v0, 0 }
 0x4ae   :  { %2439 = vmatpush3.bf16.xpose.msra.mxu1 %v617_v62  ;;  %v552_v4 = vsel %vm84_vm0, %v539_v1, 0 }
 0x4af   :  { %2427 = vmatpush3.bf16.xpose.msra.mxu0 %v549_v63  ;;  %2440 = vmatprep.subr.bf16.mxu1 %v2778_v3 }
 0x4b0   :  { %2428 = vmatprep.subr.bf16.mxu0 %v2778_v3  ;;  %v609_v5 = vpop.permute.xlu1 %608 }
 0x4b1   :  { %v541_v6 = vpop.permute.xlu0 %540  ;;  %v623_v7 = vsel %vm84_vm0, %v609_v5, 0 }
 0x4b2   :  { %v555_v9 = vsel %vm84_vm0, %v541_v6, 0 }
 0x4b6   :  { %2441 = vmatpush3.bf16.xpose.msra.mxu1 %v620_v2 }
 0x4b7   :  { %2429 = vmatpush3.bf16.xpose.msra.mxu0 %v552_v4  ;;  %2442 = vmatprep.subr.bf16.mxu1 %v2778_v3 }
 0x4b8   :  { %2430 = vmatprep.subr.bf16.mxu0 %v2778_v3 }
 0x4be   :  { %2443 = vmatpush3.bf16.xpose.msra.mxu1 %v623_v7 }
 0x4bf   :  { %2431 = vmatpush3.bf16.xpose.msra.mxu0 %v555_v9  ;;  %2460 = vmatprep.subr.bf16.mxu1 %v2778_v3 }
 0x4c0   :  { %2448 = vmatprep.subr.bf16.mxu0 %v2552_v39 }
 0x4c5   :  { %2445 = vmatmul.mubr.msk.bf16.vlgmr.msra.gmra.mrb[4].mxu1 %vm84_vm0, %v521_v17 }
 0x4c6   :  { %2433 = vmatmul.mubr.msk.bf16.vlgmr.msra.gmra.mrb[8].mxu0 %vm84_vm0, %v520_v18  ;;  %2468 = vmatprep.mubr.msk.bf16.mxu1 %vm2780_vm2, %v2778_v3 }
 0x4c7   :  { %2449 = vmatpush3.bf16.msra.mxu0 %v2552_v39 }
 0x4c8   :  { %2450 = vmatprep.subr.bf16.mxu0 %v2553_v40 }
 0x4cb   :  { %2451 = vmatpush3.bf16.msra.mxu0 %v2553_v40  ;;  %v2556_v40 = vld [vmem:[#allocation5 + $0x40] sm:$0xff]  }
 0x4cc   :  { %2452 = vmatprep.subr.bf16.mxu0 %v2554_v41 }
 0x4cf   :  { %2453 = vmatpush3.bf16.msra.mxu0 %v2554_v41 }
 0x598   :  { %v659_v19 = vpop.f32.mrb[4].mxu1 }
 0x599   :  { %v591_v20 = vpop.f32.mrb[8].mxu0  ;;  %v2446_v21 = vpop.f32.mrb[5].mxu1  ;;  %v672_v37 = vsel %vm207_vm1, %v659_v19, -inf }
 0x59a   :  { %v2434_v30 = vpop.f32.mrb[9].mxu0  ;;  %v662_v31 = vpop.f32.mrb[6].mxu1  ;;  %v666_v32 = vsel %vm207_vm1, %v591_v20, -inf }
 0x59b   :  { %v2447_v33 = vpop.f32.mrb[7].mxu1  ;;  %667 = vmax.xlane.f32.xlu0 %v666_v32  ;;  %v594_v34 = vpop.f32.mrb[10].mxu0  ;;  %v675_v38 = vsel %vm207_vm1, %v662_v31, -inf }
 0x59c   :  { %v2435_v35 = vpop.f32.mrb[11].mxu0  ;;  %v669_v36 = vsel %vm207_vm1, %v594_v34, -inf }
 0x59d   :  { %670 = vmax.xlane.f32.xlu1 %v669_v36 }
 0x59f   :  { %673 = vmax.xlane.f32.xlu0 %v672_v37 }
 0x5a3   :  { %676 = vmax.xlane.f32.xlu0 %v675_v38 }
 0x5ae   :  { %482 = vrot.lane.b32.xlu1 %v2898_v22, %s2771_s22  ;;  %v2555_v22 = vld [vmem:[#allocation5 + $0xc8] sm:$0xff]  }
 0x5af   :  { %2454 = vmatprep.subr.bf16.mxu0 %v2555_v22 }
 0x5b0   :  { %2455 = vmatpush3.bf16.msra.mxu0 %v2555_v22 }
 0x5b1   :  { %2472 = vmatprep.subr.bf16.mxu0 %v2778_v3 }
 0x5b2   :  { %484 = vrot.lane.b32.xlu1 %v2904_v24, %s2771_s22 }
 0x5b6   :  { %486 = vrot.lane.b32.xlu1 %v2910_v26, %s2771_s22 }
 0x5b9   :  { %480 = vrot.lane.b32.xlu0 %v2900_v23, %s2771_s22 }
 0x5ba   :  { %490 = vrot.lane.b32.xlu1 %v2916_v28, %s2771_s22 }
 0x5bd   :  { %488 = vrot.lane.b32.xlu0 %v2906_v25, %s2771_s22 }
 0x5be   :  { %494 = vrot.lane.b32.xlu1 %v2919_v29, %s2771_s22 }
 0x5c1   :  { %492 = vrot.lane.b32.xlu0 %v2912_v27, %s2771_s22 }
 0x628   :  { %v668_v23 = vpop.xlane.xlu0 %667 }
 0x629   :  { %v678_v24 = vsub.f32 %v591_v20, %v668_v23 }
 0x62a   :  { %v671_v26 = vpop.xlane.xlu1 %670 }
 0x62b   :  { %v682_v28 = vmul.f32 1.442695, %v678_v24  ;;  %v679_v42 = vsub.f32 %v594_v34, %v671_v26 }
 0x62c   :  { %v674_v43 = vpop.xlane.xlu0 %673 }
 0x62d   :  { %v684_v25 = vmul.f32 1.442695, %v679_v42  ;;  %v680_v44 = vsub.f32 %v659_v19, %v674_v43  ;;  %2594 = vpow2.f32 %v682_v28 }
 0x62e   :  { %v483_v45 = vpop.permute.xlu1 %482 }
 0x62f   :  { %2596 = vpow2.f32 %v684_v25  ;;  %v686_v29 = vmul.f32 1.442695, %v680_v44  ;;  %v505_v49 = vmul.f32 %v483_v45, %v2934_v15  ;;  %v513_v51 = vmul.f32 %v483_v45, %v2932_v13 }
 0x630   :  { %v677_v46 = vpop.xlane.xlu0 %676 }
 0x631   :  { %v681_v47 = vsub.f32 %v662_v31, %v677_v46  ;;  %2598 = vpow2.f32 %v686_v29 }
 0x632   :  { %v485_v48 = vpop.permute.xlu1 %484 }
 0x633   :  { %v688_v27 = vmul.f32 1.442695, %v681_v47  ;;  %v506_v2 = vmul.f32 %v485_v48, %v2930_v11  ;;  %v514_v4 = vmul.f32 %v485_v48, %v2928_v8 }
 0x634   :  { %v481_v50 = vpop.permute.xlu0 %480 }
 0x635   :  { %2600 = vpow2.f32 %v688_v27  ;;  %v504_v52 = vmul.f32 %v481_v50, %v2930_v11  ;;  %v512_v53 = vmul.f32 %v481_v50, %v2928_v8 }
 0x636   :  { %v487_v55 = vpop.permute.xlu1 %486 }
 0x637   :  { %v507_v57 = vmul.f32 %v487_v55, %v2934_v15  ;;  %v515_v59 = vmul.f32 %v487_v55, %v2932_v13  ;;  %v797_v61 = vpack.c.bf16 %v513_v51, %v512_v53  ;;  %v793_v62 = vpack.c.bf16 %v505_v49, %v504_v52  ;;  %v3006_v63 = vpop.eup %2594  ;;  %v2557_v52 = vld [vmem:[#allocation5 + $0x48] sm:$0xff]  }
 0x638   :  { %v489_v0 = vpop.permute.xlu0 %488 }
 0x639   :  { %v3008_v1 = vpop.eup %2596  ;;  %865 = vrot.lane.b32.xlu1 %v797_v61, %s2771_s22  ;;  %805 = vrot.lane.b32.xlu0 %v793_v62, %s2771_s22  ;;  %v798_v10 = vpack.c.bf16 %v515_v59, %v514_v4  ;;  %v794_v12 = vpack.c.bf16 %v507_v57, %v506_v2  ;;  %v508_v14 = vmul.f32 %v489_v0, %v2930_v11  ;;  %v2253_v4 = vld [vmem:[#allocation7 + $0x65] ss:$0 sm:$0xff] }
 0x63a   :  { %v491_v5 = vpop.permute.xlu1 %490  ;;  %v690_v6 = vpack.c.bf16 %v3008_v1, %v3006_v63  ;;  %v516_v16 = vmul.f32 %v489_v0, %v2928_v8 }
 0x63b   :  { %v509_v7 = vmul.f32 %v491_v5, %v2934_v15  ;;  %v517_v9 = vmul.f32 %v491_v5, %v2932_v13  ;;  %v2599_v17 = vpop.eup %2598 }
 0x63c   :  { %2456 = vmatprep.mubr.msk.bf16.mxu0 %vm207_vm1, %v690_v6  ;;  %v493_v18 = vpop.permute.xlu0 %492 }
 0x63d   :  { %867 = vrot.lane.b32.xlu1 %v798_v10, %s2771_s22  ;;  %807 = vrot.lane.b32.xlu0 %v794_v12, %s2771_s22  ;;  %v799_v31 = vpack.c.bf16 %v517_v9, %v516_v16  ;;  %v795_v32 = vpack.c.bf16 %v509_v7, %v508_v14  ;;  %v510_v34 = vmul.f32 %v493_v18, %v2930_v11 }
 0x63e   :  { %v495_v19 = vpop.permute.xlu1 %494  ;;  %v518_v35 = vmul.f32 %v493_v18, %v2928_v8 }
 0x63f   :  { %v2601_v20 = vpop.eup %2600  ;;  %v511_v21 = vmul.f32 %v495_v19, %v2934_v15  ;;  %v519_v30 = vmul.f32 %v495_v19, %v2932_v13 }
 0x640   :  { %v691_v33 = vpack.c.bf16 %v2601_v20, %v2599_v17 }
 0x641   :  { %869 = vrot.lane.b32.xlu1 %v799_v31, %s2771_s22  ;;  %809 = vrot.lane.b32.xlu0 %v795_v32, %s2771_s22  ;;  %v800_v36 = vpack.c.bf16 %v519_v30, %v518_v35  ;;  %v796_v37 = vpack.c.bf16 %v511_v21, %v510_v34 }
 0x642   :  { %2457 = vmatmul.mubr.msk.bf16.vlgmr.msra.gmra.mrb[12].mxu0 %vm207_vm1, %v691_v33 }
 0x643   :  { %2480 = vmatprep.mubr.msk.bf16.mxu0 %vm2780_vm2, %v2778_v3 }
 0x645   :  { %871 = vrot.lane.b32.xlu1 %v800_v36, %s2771_s22  ;;  %811 = vrot.lane.b32.xlu0 %v796_v37, %s2771_s22 }
 0x6ab   :  { %v806_v13 = vpop.permute.xlu0 %805  ;;  %v866_v15 = vpop.permute.xlu1 %865 }
 0x6ac   :  { %2461 = vmatpush3.bf16.msra.mxu1 %v806_v13  ;;  %2473 = vmatpush3.bf16.msra.mxu0 %v866_v15 }
 0x6ad   :  { %2462 = vmatprep.subr.bf16.mxu1 %v2778_v3  ;;  %2474 = vmatprep.subr.bf16.mxu0 %v2778_v3 }
 0x6af   :  { %v808_v8 = vpop.permute.xlu0 %807  ;;  %v868_v11 = vpop.permute.xlu1 %867 }
 0x6b0   :  { %2463 = vmatpush3.bf16.msra.mxu1 %v808_v8  ;;  %2475 = vmatpush3.bf16.msra.mxu0 %v868_v11 }
 0x6b1   :  { %2464 = vmatprep.subr.bf16.mxu1 %v2778_v3  ;;  %2476 = vmatprep.subr.bf16.mxu0 %v2778_v3 }
 0x6b3   :  { %v810_v38 = vpop.permute.xlu0 %809  ;;  %v870_v39 = vpop.permute.xlu1 %869 }
 0x6b4   :  { %2465 = vmatpush3.bf16.msra.mxu1 %v810_v38  ;;  %2477 = vmatpush3.bf16.msra.mxu0 %v870_v39 }
 0x6b5   :  { %2466 = vmatprep.subr.bf16.mxu1 %v2778_v3  ;;  %2478 = vmatprep.subr.bf16.mxu0 %v2778_v3 }
 0x6b7   :  { %v812_v41 = vpop.permute.xlu0 %811  ;;  %v872_v22 = vpop.permute.xlu1 %871 }
 0x6b8   :  { %2467 = vmatpush3.bf16.msra.mxu1 %v812_v41  ;;  %2479 = vmatpush3.bf16.msra.mxu0 %v872_v22 }
 0x6b9   :  { %2484 = vmatprep.subr.bf16.mxu1 %v2556_v40 }
 0x715   :  { %v2458_v23 = vpop.f32.mrb[12].mxu0 }
 0x716   :  { %v781_v24 = vadd.f32 1e-20, %v2458_v23  ;;  %v764_v26 = vpop.f32.mrb[13].mxu0 }
 0x717   :  { %v779_v28 = vadd.f32 1e-20, %v764_v26  ;;  %v2459_v42 = vpop.f32.mrb[14].mxu0  ;;  %v2558_v26 = vld [vmem:[#allocation5 + $0x50] sm:$0xff]  }
 0x718   :  { %2602 = vrcp.f32 %v781_v24  ;;  %v782_v43 = vadd.f32 1e-20, %v2459_v42  ;;  %v767_v25 = vpop.f32.mrb[15].mxu0 }
 0x719   :  { %2604 = vrcp.f32 %v779_v28  ;;  %v780_v44 = vadd.f32 1e-20, %v767_v25  ;;  %v2559_v28 = vld [vmem:[#allocation5 + $0x58] sm:$0xff]  }
 0x71a   :  { %2606 = vrcp.f32 %v782_v43 }
 0x71b   :  { %2608 = vrcp.f32 %v780_v44 }
 0x722   :  { %v2603_v45 = vpop.eup %2602 }
 0x723   :  { %v2605_v3 = vpop.eup %2604  ;;  %v789_v47 = vmul.f32 %v2603_v45, %v2599_v17 }
 0x724   :  { %v2607_v29 = vpop.eup %2606  ;;  %v787_v27 = vmul.f32 %v2605_v3, %v3006_v63 }
 0x725   :  { %v2609_v46 = vpop.eup %2608  ;;  %v790_v48 = vmul.f32 %v2607_v29, %v2601_v20 }
 0x726   :  { %v788_v49 = vmul.f32 %v2609_v46, %v3008_v1 }
 0x727   :  { %v792_v50 = vpack.c.bf16 %v790_v48, %v789_v47 }
 0x728   :  { %v791_v51 = vpack.c.bf16 %v788_v49, %v787_v27 }
 0x729   :  { %2481 = vmatmul.mubr.msk.bf16.vlgmr.msra.gmra.mrb[16].mxu0 %vm207_vm1, %v792_v50 }
 0x72a   :  { %2469 = vmatmul.mubr.msk.bf16.vlgmr.msra.gmra.mrb[8].mxu1 %vm207_vm1, %v791_v51  ;;  %v2258_v51 = vld [vmem:[#allocation7 + $0x66] ss:$0 sm:$0xff] }
 0x72b   :  { %2485 = vmatpush3.bf16.msra.mxu1 %v2556_v40 }
 0x72c   :  { %2486 = vmatprep.subr.bf16.mxu1 %v2557_v52 }
 0x72f   :  { %2487 = vmatpush3.bf16.msra.mxu1 %v2557_v52 }
 0x730   :  { %2492 = vmatprep.subr.bf16.mxu1 %v2558_v26 }
 0x7fc   :  { %v914_v53 = vpop.f32.mrb[16].mxu0 }
 0x7fd   :  { %v854_v55 = vpop.f32.mrb[8].mxu1  ;;  %v2482_v57 = vpop.f32.mrb[17].mxu0 }
 0x7fe   :  { %v2470_v59 = vpop.f32.mrb[9].mxu1  ;;  %v917_v61 = vpop.f32.mrb[18].mxu0 }
 0x7ff   :  { %v926_v62 = vpack.c.bf16 %v917_v61, %v914_v53  ;;  %v857_v0 = vpop.f32.mrb[10].mxu1  ;;  %v2483_v63 = vpop.f32.mrb[19].mxu0  ;;  %v2259_v61 = vld [vmem:[#allocation7 + $0x67] ss:$0 sm:$0xff] }
 0x800   :  { %v925_v2 = vpack.c.bf16 %v857_v0, %v854_v55  ;;  %v2471_v1 = vpop.f32.mrb[11].mxu1 }
 0x802   :  { %2488 = vmatprep.mubr.msk.bf16.mxu1 %vm84_vm0, %v925_v2 }
 0x803   :  { %2489 = vmatmul.mubr.msk.bf16.vlgmr.msra.gmra.mrb[12].mxu1 %vm84_vm0, %v926_v62 }
 0x804   :  { %2493 = vmatpush3.bf16.msra.mxu1 %v2558_v26  ;;  %v2561_v26 = vld [vmem:[#allocation5 + $0x68] sm:$0xff]  }
 0x805   :  { %2494 = vmatprep.subr.bf16.mxu1 %v2559_v28 }
 0x808   :  { %2495 = vmatpush3.bf16.msra.mxu1 %v2559_v28  ;;  %v2562_v28 = vld [vmem:[#allocation5 + $0x70] sm:$0xff]  }
 0x8d6   :  { %v2490_v5 = vpop.f32.mrb[12].mxu1 }
 0x8d7   :  { %v984_v6 = vpop.f32.mrb[13].mxu1  ;;  %v993_v7 = vadd.f32 %v2490_v5, %v2253_v4 }
 0x8d8   :  { %v985_v9 = vadd.f32 %v2253_v4, %v984_v6  ;;  %v2491_v10 = vpop.f32.mrb[14].mxu1 }
 0x8d9   :  { %v987_v12 = vpop.f32.mrb[15].mxu1  ;;  %v3050_v17 = vadd.f32 %v993_v7, %v2863_v54  ;;  %v996_v18 = vadd.f32 %v2491_v10, %v2253_v4 }
 0x8da   :  { %v3047_v14 = vadd.f32 %v985_v9, %v2866_v56  ;;  %v988_v16 = vadd.f32 %v2253_v4, %v987_v12 }
 0x8db   :  { %3611 = vst [vmem:[#allocation13_spill] sm:$0xff] %v3050_v17  ;;  %v3060_v30 = vadd.f32 %v996_v18, %v2869_v58  ;;  %v1009_v56 = vsel %vm84_vm0, %v3050_v17, 0.0 }
 0x8dc   :  { %3610 = vst [vmem:[#allocation12_spill] sm:$0xff] %v3047_v14  ;;  %v3053_v19 = vadd.f32 %v988_v16, %v2874_v60  ;;  %v1003_v20 = vsel %vm84_vm0, %v3047_v14, 0.0  ;;  %v2260_v16 = vld [vmem:[#allocation7 + $0x68] ss:$0 sm:$0xff] }
 0x8dd   :  { %1004 = vadd.xlane.f32.xlu0 %v1003_v20  ;;  %3613 = vst [vmem:[#allocation15_spill] sm:$0xff] %v3060_v30  ;;  %v1012_v54 = vsel %vm84_vm0, %v3060_v30, 0.0 }
 0x8de   :  { %3612 = vst [vmem:[#allocation14_spill] sm:$0xff] %v3053_v19  ;;  %v1006_v21 = vsel %vm84_vm0, %v3053_v19, 0.0 }
 0x8df   :  { %1007 = vadd.xlane.f32.xlu1 %v1006_v21 }
 0x8e1   :  { %1010 = vadd.xlane.f32.xlu0 %v1009_v56 }
 0x8e5   :  { %1013 = vadd.xlane.f32.xlu0 %v1012_v54 }
 0x96a   :  { %v1005_v60 = vpop.xlane.xlu0 %1004 }
 0x96b   :  { %v1015_v31 = vmul.f32 0.03125, %v1005_v60 }
 0x96c   :  { %v1008_v32 = vpop.xlane.xlu1 %1007 }
 0x96d   :  { %v1019_v33 = vsub.f32 %v3047_v14, %v1015_v31  ;;  %v1016_v34 = vmul.f32 0.03125, %v1008_v32 }
 0x96e   :  { %v1011_v35 = vpop.xlane.xlu0 %1010 }
 0x96f   :  { %v1020_v36 = vsub.f32 %v3053_v19, %v1016_v34  ;;  %v1017_v37 = vmul.f32 0.03125, %v1011_v35  ;;  %v1023_v58 = vmul.f32 %v1019_v33, %v1019_v33  ;;  %v3289_v19 = vld [vmem:[#allocation7 + $0xc] ss:$0 sm:$0xff] }
 0x970   :  { %3616 = vst [vmem:[#allocation18_spill] sm:$0xff] %v3289_v19 }
 0x971   :  { %v1021_v13 = vsub.f32 %v3050_v17, %v1017_v37  ;;  %v1027_v15 = vsel %vm84_vm0, %v1023_v58, 0.0  ;;  %v1024_v8 = vmul.f32 %v1020_v36, %v1020_v36  ;;  %v3286_v17 = vld [vmem:[#allocation7 + $0x4] ss:$0 sm:$0xff] }
 0x972   :  { %1028 = vadd.xlane.f32.xlu0 %v1027_v15  ;;  %v1014_v11 = vpop.xlane.xlu0 %1013  ;;  %3615 = vst [vmem:[#allocation17_spill] sm:$0xff] %v3286_v17 }
 0x973   :  { %v1018_v38 = vmul.f32 0.03125, %v1014_v11  ;;  %v1030_v39 = vsel %vm84_vm0, %v1024_v8, 0.0  ;;  %v1025_v40 = vmul.f32 %v1021_v13, %v1021_v13 }
 0x974   :  { %1031 = vadd.xlane.f32.xlu1 %v1030_v39 }
 0x975   :  { %v1022_v41 = vsub.f32 %v3060_v30, %v1018_v38  ;;  %v1033_v22 = vsel %vm84_vm0, %v1025_v40, 0.0 }
 0x976   :  { %1034 = vadd.xlane.f32.xlu0 %v1033_v22 }
 0x977   :  { %v1026_v23 = vmul.f32 %v1022_v41, %v1022_v41 }
 0x979   :  { %v1036_v24 = vsel %vm84_vm0, %v1026_v23, 0.0 }
 0x97a   :  { %1037 = vadd.xlane.f32.xlu1 %v1036_v24  ;;  %v2560_v24 = vld [vmem:[#allocation5 + $0x60] sm:$0xff]  }
 0x97b   :  { %2500 = vmatprep.subr.bf16.mxu0 %v2560_v24 }
 0x97c   :  { %2501 = vmatpush3.bf16.msra.mxu0 %v2560_v24 }
 0x97d   :  { %2502 = vmatprep.subr.bf16.mxu0 %v2561_v26 }
 0x980   :  { %2503 = vmatpush3.bf16.msra.mxu0 %v2561_v26  ;;  %v3177_v26 = vld [vmem:[#allocation7 + $0x1b] ss:$0 sm:$0xff] }
 0x981   :  { %2504 = vmatprep.subr.bf16.mxu0 %v2562_v28 }
 0x984   :  { %2505 = vmatpush3.bf16.msra.mxu0 %v2562_v28 }
 0x9ff   :  { %v1029_v42 = vpop.xlane.xlu0 %1028 }
 0xa00   :  { %v1039_v43 = vmul.f32 0.03125, %v1029_v42  ;;  %v2563_v42 = vld [vmem:[#allocation5 + $0x78] sm:$0xff]  }
 0xa01   :  { %v1032_v25 = vpop.xlane.xlu1 %1031  ;;  %2506 = vmatprep.subr.bf16.mxu0 %v2563_v42 }
 0xa02   :  { %v1043_v44 = vadd.f32 1e-05, %v1039_v43  ;;  %v1040_v45 = vmul.f32 0.03125, %v1032_v25  ;;  %2507 = vmatpush3.bf16.msra.mxu0 %v2563_v42  ;;  %v1232_v43 = vlaneseq  ;;  %v2269_v25 = vld [vmem:[#allocation7 + $0x7] ss:$0 sm:$0xff] }
 0xa03   :  { %v1035_v3 = vpop.xlane.xlu0 %1034 }
 0xa04   :  { %2610 = vrsqrt.f32 %v1043_v44  ;;  %v1044_v29 = vadd.f32 1e-05, %v1040_v45  ;;  %v1041_v46 = vmul.f32 0.03125, %v1035_v3  ;;  %v3086_v44 = vshrl.u32 %v1232_v43, 7  ;;  %v3088_v45 = vld [vmem:[#allocation7 + $0xf] ss:$0 sm:$0xff] }
 0xa06   :  { %2612 = vrsqrt.f32 %v1044_v29  ;;  %v1045_v47 = vadd.f32 1e-05, %v1041_v46  ;;  %v1200_v29 = vmul.f32 0.0, %v2269_v25  ;;  %v2272_v46 = vld [vmem:[#allocation7] ss:$0 sm:$0xff]  ;;  %vm1234_vm3 = vcmp.lt.s32.totalorder %v3086_v44, 7 }
 0xa07   :  { %v1038_v48 = vpop.xlane.xlu1 %1037 }
 0xa08   :  { %2614 = vrsqrt.f32 %v1045_v47  ;;  %v1042_v27 = vmul.f32 0.03125, %v1038_v48 }
 0xa0a   :  { %v1046_v49 = vadd.f32 1e-05, %v1042_v27  ;;  %v3092_v27 = vld [vmem:[#allocation7 + $0x17] ss:$0 sm:$0xff] }
 0xa0c   :  { %2616 = vrsqrt.f32 %v1046_v49 }
 0xa0e   :  { %v2611_v50 = vpop.eup %2610 }
 0xa0f   :  { %v1051_v52 = vmul.f32 %v2611_v50, %v1019_v33  ;;  %v3096_v50 = vmul.f32 0.0, %v3092_v27 }
 0xa10   :  { %v2613_v53 = vpop.eup %2612 }
 0xa11   :  { %v1052_v55 = vmul.f32 %v2613_v53, %v1020_v36  ;;  %v1060_v57 = vmul.f32 %v2258_v51, %v1051_v52  ;;  %v3100_v52 = vld [vmem:[#allocation7 + $0x18] ss:$0 sm:$0xff] }
 0xa12   :  { %v2615_v59 = vpop.eup %2614 }
 0xa13   :  { %v1053_v62 = vmul.f32 %v2615_v59, %v1021_v13  ;;  %v1061_v0 = vmul.f32 %v2258_v51, %v1052_v55  ;;  %v1069_v63 = vadd.f32 %v2259_v61, %v1060_v57  ;;  %v3106_v57 = vmul.f32 0.0, %v3100_v52  ;;  %v3108_v59 = vld [vmem:[#allocation7 + $0x19] ss:$0 sm:$0xff] }
 0xa15   :  { %v1070_v2 = vadd.f32 %v2259_v61, %v1061_v0  ;;  %v1062_v4 = vmul.f32 %v2258_v51, %v1053_v62 }
 0xa16   :  { %v2617_v1 = vpop.eup %2616 }
 0xa17   :  { %v1054_v5 = vmul.f32 %v2617_v1, %v1022_v41  ;;  %v1077_v6 = vpack.c.bf16 %v1070_v2, %v1069_v63  ;;  %v1071_v9 = vadd.f32 %v2259_v61, %v1062_v4  ;;  %v3114_v63 = vmul.f32 0.0, %v3108_v59  ;;  %v3119_v4 = vld [vmem:[#allocation7 + $0x8] ss:$0 sm:$0xff] }
 0xa19   :  { %v1063_v7 = vmul.f32 %v2258_v51, %v1054_v5  ;;  %2496 = vmatprep.mubr.msk.bf16.mxu1 %vm84_vm0, %v1077_v6  ;;  %v3098_v51 = vmul.f32 0.0, %v2272_v46 }
 0xa1b   :  { %v1072_v10 = vadd.f32 %v2259_v61, %v1063_v7  ;;  %v3110_v61 = vld [vmem:[#allocation7 + $0x1a] ss:$0 sm:$0xff] }
 0xa1c   :  { %v3117_v2 = vmul.f32 0.0, %v3110_v61 }
 0xa1d   :  { %v1078_v12 = vpack.c.bf16 %v1072_v10, %v1071_v9 }
 0xa1f   :  { %2497 = vmatmul.mubr.msk.bf16.vlgmr.msra.gmra.mrb[16].mxu1 %vm84_vm0, %v1078_v12 }
 0xaf2   :  { %v2498_v18 = vpop.f32.mrb[16].mxu1 }
 0xaf3   :  { %v1145_v20 = vadd.f32 %v2498_v18, %v2260_v16  ;;  %v1136_v21 = vpop.f32.mrb[17].mxu1 }
 0xaf4   :  { %v1137_v56 = vadd.f32 %v2260_v16, %v1136_v21  ;;  %v2499_v54 = vpop.f32.mrb[18].mxu1 }
 0xaf5   :  { %v2267_v60 = vmul.f32 -1.442695, %v1145_v20  ;;  %v3076_v31 = vadd.f32 %v2499_v54, %v2260_v16  ;;  %v1139_v32 = vpop.f32.mrb[19].mxu1 }
 0xaf6   :  { %v2265_v33 = vmul.f32 -1.442695, %v1137_v56  ;;  %v3078_v34 = vadd.f32 %v2260_v16, %v1139_v32 }
 0xaf7   :  { %2618 = vpow2.f32 %v2267_v60  ;;  %v2268_v35 = vmul.f32 -1.442695, %v3076_v31 }
 0xaf8   :  { %2620 = vpow2.f32 %v2265_v33  ;;  %v2266_v36 = vmul.f32 -1.442695, %v3078_v34 }
 0xafa   :  { %2622 = vpow2.f32 %v2266_v36 }
 0xafb   :  { %2624 = vpow2.f32 %v2268_v35 }
 0xb01   :  { %v2619_v37 = vpop.eup %2618 }
 0xb02   :  { %v2621_v58 = vpop.eup %2620  ;;  %v1165_v13 = vadd.f32 1.0, %v2619_v37 }
 0xb03   :  { %v1163_v15 = vadd.f32 1.0, %v2621_v58 }
 0xb04   :  { %v2623_v8 = vpop.eup %2622  ;;  %2626 = vrcp.f32 %v1165_v13 }
 0xb05   :  { %v2625_v11 = vpop.eup %2624  ;;  %2628 = vrcp.f32 %v1163_v15  ;;  %v1164_v38 = vadd.f32 1.0, %v2623_v8 }
 0xb06   :  { %v1166_v39 = vadd.f32 1.0, %v2625_v11 }
 0xb07   :  { %2630 = vrcp.f32 %v1164_v38  ;;  %v3161_v38 = vld [vmem:[#allocation7 + $0x10] ss:$0 sm:$0xff] }
 0xb08   :  { %2632 = vrcp.f32 %v1166_v39 }
 0xb0e   :  { %v2627_v40 = vpop.eup %2626 }
 0xb0f   :  { %v2629_v41 = vpop.eup %2628  ;;  %1183 = vrot.lane.b32.xlu1 %v2627_v40, %s2771_s22 }
 0xb10   :  { %1179 = vrot.lane.b32.xlu0 %v2629_v41, %s2771_s22 }
 0xb11   :  { %v2631_v22 = vpop.eup %2630 }
 0xb12   :  { %v2633_v23 = vpop.eup %2632 }
 0xb13   :  { %1181 = vrot.lane.b32.xlu1 %v2631_v22, %s2771_s22 }
 0xb17   :  { %1185 = vrot.lane.b32.xlu1 %v2633_v23, %s2771_s22  ;;  %s2781_s22 = smov [#allocation8]  }
 0xb18   :  { %s2207_s25 = sshll.u32 %s2781_s22, 4  ;;  %s2208_s25 = int_to_ptr.vmem [resolvable:$true] %s2207_s25 }
 0xb19   :  { %s2742_s26 = scalar_lea.vmem %s2208_s25, 512  ;;  %p2747_p11 = scmp.lt.s32.totalorder %s2208_s25, %s2208_s25 }
 0xb1a   :  { %p2743_p10 = scmp.ne.s32.totalorder %s2208_s25, %s2742_s26  ;;  %p2748_p12 = scmp.lt.s32.totalorder %s2742_s26, %s2742_s26 }
 0xb1c   :  { %p2749_p13 = por %p2748_p12, %p2747_p11 }
 0xb1e   :  { %p2750_p0 = pnand %p2749_p13, %p2743_p10 }
 0xb81   :  { %v1184_v3 = vpop.permute.xlu1 %1183 }
 0xb82   :  { %v3090_v47 = vmul.f32 %v1184_v3, %v1145_v20  ;;  %v1180_v48 = vpop.permute.xlu0 %1179  ;;  %v3137_v20 = vld [vmem:[#allocation7 + $0x1] ss:$0 sm:$0xff] }
 0xb83   :  { %v1191_v49 = vmul.f32 %v1180_v48, %v1137_v56 }
 0xb84   :  { %v1210_v53 = vmul.f32 %v3088_v45, %v3090_v47  ;;  %v3597_v55 = vrot.slane %v3090_v47, 1  ;;  %v3122_v5 = vmul.f32 %v2269_v25, %v3090_v47 }
 0xb85   :  { %v1208_v62 = vmul.f32 %v3088_v45, %v1191_v49  ;;  %v1228_v0 = vrot.slane %v1191_v49, 1  ;;  %v1182_v1 = vpop.permute.xlu1 %1181  ;;  %v1201_v7 = vmul.f32 %v2269_v25, %v1191_v49 }
 0xb86   :  { %v3128_v6 = vsel %vm1234_vm3, 0.0, %v3597_v55  ;;  %v1192_v9 = vmul.f32 %v1182_v1, %v3078_v34  ;;  %v3131_v10 = vadd.f32 %v1210_v53, %v1200_v29 }
 0xb87   :  { %v3134_v12 = vmul.f32 %v2272_v46, %v3128_v6  ;;  %v3596_v16 = vrot.slane %v3128_v6, 1  ;;  %v1212_v18 = vadd.f32 %v1208_v62, %v1200_v29  ;;  %v1239_v21 = vsel %vm1234_vm3, 0.0, %v1228_v0 }
 0xb88   :  { %v1209_v56 = vmul.f32 %v3088_v45, %v1192_v9  ;;  %v1221_v54 = vmul.f32 %v3092_v27, %v1192_v9  ;;  %v1230_v60 = vrot.slane %v1192_v9, 1  ;;  %v3145_v32 = vmul.f32 %v3119_v4, %v3128_v6 }
 0xb89   :  { %v3151_v33 = vsel %vm1234_vm3, 0.0, %v3596_v16  ;;  %v1247_v34 = vmul.f32 %v2272_v46, %v1239_v21  ;;  %v1291_v35 = vrot.slane %v1239_v21, 1  ;;  %v1186_v36 = vpop.permute.xlu1 %1185  ;;  %v1258_v58 = vmul.f32 %v3119_v4, %v1239_v21 }
 0xb8a   :  { %v3595_v37 = vrot.slane %v3151_v33, 1  ;;  %v1213_v13 = vadd.f32 %v1209_v56, %v1201_v7  ;;  %v1224_v15 = vadd.f32 %v1221_v54, %v1212_v18  ;;  %v3157_v8 = vmul.f32 %v3137_v20, %v3151_v33  ;;  %v3208_v56 = vld [vmem:[#allocation7 + $0x9] ss:$0 sm:$0xff]  ;;  %v3210_v54 = vld [vmem:[#allocation7 + $0x11] ss:$0 sm:$0xff] }
 0xb8b   :  { %v1303_v11 = vsel %vm1234_vm3, 0.0, %v1291_v35  ;;  %v1235_v39 = vsel %vm1234_vm3, %v1230_v60, 0.0  ;;  %v1237_v40 = vsel %vm1234_vm3, %v1228_v0, %v1230_v60  ;;  %v3175_v24 = vmul.f32 %v1186_v36, %v3076_v31  ;;  %v3237_v18 = vld [vmem:[#allocation7 + $0x12] ss:$0 sm:$0xff] }
 0xb8c   :  { %v3171_v41 = vsel %vm1234_vm3, 0.0, %v3595_v37  ;;  %v1356_v22 = vrot.slane %v1303_v11, 1  ;;  %v1225_v23 = vadd.f32 %v3096_v50, %v1213_v13  ;;  %v1310_v42 = vmul.f32 %v3137_v20, %v1303_v11 }
 0xb8d   :  { %v3594_v28 = vrot.slane %v3171_v41, 1  ;;  %v1249_v43 = vadd.f32 %v3098_v51, %v1224_v15  ;;  %v1259_v25 = vmul.f32 %v3119_v4, %v1237_v40  ;;  %v1271_v46 = vmul.f32 %v3161_v38, %v1237_v40 }
 0xb8e   :  { %v3185_v3 = vsel %vm1234_vm3, 0.0, %v1356_v22  ;;  %v1250_v29 = vadd.f32 %v1247_v34, %v1225_v23  ;;  %v1272_v31 = vmul.f32 %v3161_v38, %v1235_v39  ;;  %v1293_v62 = vrot.slane %v1237_v40, 1 }
 0xb8f   :  { %v3193_v48 = vsel %vm1234_vm3, 0.0, %v3594_v28  ;;  %v1433_v49 = vrot.slane %v3185_v3, 1  ;;  %v1262_v53 = vadd.f32 %v1258_v58, %v1249_v43  ;;  %v1284_v7 = vmul.f32 %v3100_v52, %v1235_v39 }
 0xb90   :  { %v3198_v0 = vmul.f32 %v3177_v26, %v3193_v48  ;;  %v1263_v1 = vadd.f32 %v1259_v25, %v1250_v29  ;;  %v1295_v9 = vrot.slane %v1235_v39, 1  ;;  %v1301_v34 = vsel %vm1234_vm3, %v1291_v35, %v1293_v62 }
 0xb91   :  { %v3206_v21 = vsel %vm1234_vm3, 0.0, %v1433_v49  ;;  %v1275_v60 = vadd.f32 %v1271_v46, %v1262_v53  ;;  %v1211_v15 = vmul.f32 %v3088_v45, %v3175_v24  ;;  %v1311_v23 = vmul.f32 %v3137_v20, %v1301_v34 }
 0xb92   :  { %3614 = vst [vmem:[#allocation16_spill] sm:$0xff] %v3198_v0  ;;  %v3216_v36 = vmul.f32 %v3177_v26, %v3206_v21  ;;  %v1276_v58 = vadd.f32 %v1272_v31, %v1263_v1  ;;  %v1297_v13 = vsel %vm1234_vm3, %v1295_v9, 0.0  ;;  %v1299_v40 = vsel %vm1234_vm3, %v1293_v62, %v1295_v9  ;;  %v3231_v1 = vld [vmem:[#allocation7 + $0x2] ss:$0 sm:$0xff] }
 0xb93   :  { %v1287_v39 = vadd.f32 %v1284_v7, %v1275_v60  ;;  %v1323_v43 = vmul.f32 %v3208_v56, %v1301_v34  ;;  %v1324_v25 = vmul.f32 %v3208_v56, %v1299_v40  ;;  %v1336_v29 = vmul.f32 %v3210_v54, %v1299_v40  ;;  %v3233_v7 = vld [vmem:[#allocation7 + $0xa] ss:$0 sm:$0xff] }
 0xb94   :  { %v1288_v35 = vadd.f32 %v3106_v57, %v1276_v58  ;;  %v1337_v31 = vmul.f32 %v3210_v54, %v1297_v13  ;;  %v1358_v45 = vrot.slane %v1301_v34, 1  ;;  %v1360_v53 = vrot.slane %v1299_v40, 1 }
 0xb95   :  { %v1314_v46 = vadd.f32 %v1310_v42, %v1287_v39  ;;  %v1349_v9 = vmul.f32 %v3108_v59, %v1297_v13  ;;  %v1362_v60 = vrot.slane %v1297_v13, 1  ;;  %v1215_v58 = vadd.f32 %v1211_v15, %v3122_v5 }
 0xb96   :  { %v1315_v62 = vadd.f32 %v1311_v23, %v1288_v35  ;;  %v1368_v42 = vsel %vm1234_vm3, %v1358_v45, %v1360_v53  ;;  %v1370_v34 = vsel %vm1234_vm3, %v1356_v22, %v1358_v45  ;;  %v1223_v39 = vmul.f32 %v3092_v27, %v3175_v24 }
 0xb97   :  { %v1327_v28 = vadd.f32 %v1323_v43, %v1314_v46  ;;  %v1364_v23 = vsel %vm1234_vm3, %v1362_v60, 0.0  ;;  %v1366_v13 = vsel %vm1234_vm3, %v1360_v53, %v1362_v60  ;;  %v1231_v5 = vrot.slane %v3175_v24, 1  ;;  %v3256_v60 = vld [vmem:[#allocation7 + $0x3] ss:$0 sm:$0xff]  ;;  %v3258_v24 = vld [vmem:[#allocation7 + $0xb] ss:$0 sm:$0xff] }
 0xb98   :  { %v1328_v40 = vadd.f32 %v1324_v25, %v1315_v62  ;;  %v1379_v35 = vmul.f32 %v3231_v1, %v1370_v34  ;;  %v1380_v43 = vmul.f32 %v3231_v1, %v1368_v42  ;;  %v1392_v46 = vmul.f32 %v3233_v7, %v1368_v42 }
 0xb99   :  { %v1340_v15 = vadd.f32 %v1336_v29, %v1327_v28  ;;  %v1393_v45 = vmul.f32 %v3233_v7, %v1366_v13  ;;  %v1405_v27 = vmul.f32 %v3237_v18, %v1366_v13  ;;  %v1406_v25 = vmul.f32 %v3237_v18, %v1364_v23 }
 0xb9a   :  { %v1341_v22 = vadd.f32 %v1337_v31, %v1328_v40  ;;  %v1425_v37 = vrot.slane %v1370_v34, 1  ;;  %v1427_v16 = vrot.slane %v1368_v42, 1  ;;  %v1429_v53 = vrot.slane %v1366_v13, 1  ;;  %v3265_v40 = vld [vmem:[#allocation7 + $0x13] ss:$0 sm:$0xff] }
 0xb9b   :  { %v1352_v62 = vadd.f32 %v1349_v9, %v1340_v15  ;;  %v1418_v29 = vmul.f32 %v3110_v61, %v1364_v23  ;;  %v1431_v55 = vrot.slane %v1364_v23, 1  ;;  %v3263_v31 = vadd.f32 %v1223_v39, %v3131_v10 }
 0xb9c   :  { %v1353_v28 = vadd.f32 %v3114_v63, %v1341_v22  ;;  %v1441_v9 = vsel %vm1234_vm3, %v1427_v16, %v1429_v53  ;;  %v1443_v42 = vsel %vm1234_vm3, %v1425_v37, %v1427_v16  ;;  %v1227_v34 = vadd.f32 %v3096_v50, %v1215_v58 }
 0xb9d   :  { %v1383_v11 = vadd.f32 %v1379_v35, %v1352_v62  ;;  %v1437_v15 = vsel %vm1234_vm3, %v1431_v55, 0.0  ;;  %v1439_v23 = vsel %vm1234_vm3, %v1429_v53, %v1431_v55  ;;  %v1445_v10 = vsel %vm1234_vm3, %v1433_v49, %v1425_v37 }
 0xb9e   :  { %v1384_v13 = vadd.f32 %v1380_v43, %v1353_v28  ;;  %v1452_v35 = vmul.f32 %v3256_v60, %v1443_v42  ;;  %v1453_v22 = vmul.f32 %v3256_v60, %v1441_v9  ;;  %v1465_v16 = vmul.f32 %v3258_v24, %v1441_v9 }
 0xb9f   :  { %v1396_v39 = vadd.f32 %v1392_v46, %v1383_v11  ;;  %v1466_v58 = vmul.f32 %v3258_v24, %v1439_v23  ;;  %v1478_v43 = vmul.f32 %v3265_v40, %v1439_v23  ;;  %v1479_v62 = vmul.f32 %v3265_v40, %v1437_v15 }
 0xba0   :  { %v1397_v50 = vadd.f32 %v1393_v45, %v1384_v13  ;;  %v1499_v53 = vrot.slane %v1443_v42, 1  ;;  %v1501_v3 = vrot.slane %v1441_v9, 1  ;;  %v1503_v28 = vrot.slane %v1439_v23, 1  ;;  %v3299_v9 = vld [vmem:[#allocation7 + $0x14] ss:$0 sm:$0xff] }
 0xba1   :  { %v1409_v55 = vadd.f32 %v1405_v27, %v1396_v39  ;;  %v1491_v49 = vmul.f32 %v3177_v26, %v1437_v15  ;;  %v1505_v11 = vrot.slane %v1437_v15, 1  ;;  %v1509_v46 = vrot.slane %v1445_v10, 1  ;;  %3617 = vst [vmem:[#allocation19_spill] sm:$0xff] %v3299_v9 }
 0xba2   :  { %v1410_v37 = vadd.f32 %v1406_v25, %v1397_v50  ;;  %v1517_v13 = vsel %vm1234_vm3, %v1501_v3, %v1503_v28  ;;  %v3295_v14 = vsel %vm1234_vm3, %v1499_v53, %v1501_v3  ;;  %v1236_v27 = vsel %vm1234_vm3, %v1231_v5, 0.0  ;;  %v3301_v25 = vld [vmem:[#allocation7 + $0x1c] ss:$0 sm:$0xff] }
 0xba3   :  { %v1421_v45 = vadd.f32 %v1418_v29, %v1409_v55  ;;  %v3618_v15 = vrot.slane %v3206_v21, 1  ;;  %v3312_v23 = vsel %vm1234_vm3, %v1503_v28, %v1505_v11  ;;  %v3619_v10 = vrot.slane %v3090_v47, 1 }
 0xba4   :  { %v1422_v42 = vadd.f32 %v3117_v2, %v1410_v37  ;;  %v3324_v37 = vsel %vm1234_vm3, %v1509_v46, %v1499_v53  ;;  %v1541_v47 = vmul.f32 %v3289_v19, %v1517_v13  ;;  %v1554_v21 = vmul.f32 %v3299_v9, %v3312_v23 }
 0xba5   :  { %v3308_v29 = vsel %vm1234_vm3, %v1505_v11, %v3618_v15  ;;  %v1238_v39 = vsel %vm1234_vm3, %v3619_v10, %v1231_v5  ;;  %v1456_v50 = vadd.f32 %v1452_v35, %v1421_v45  ;;  %v3620_v55 = vmov %v3618_v15 }
 0xba6   :  { %v1511_v3 = vsel %vm1234_vm3, %v3620_v55, %v1509_v46  ;;  %v1528_v15 = vmul.f32 %v3286_v17, %v3295_v14  ;;  %v1457_v28 = vadd.f32 %v1453_v22, %v1422_v42  ;;  %v1529_v11 = vmul.f32 %v3286_v17, %v1517_v13  ;;  %v3338_v46 = vld [vmem:[#allocation7 + $0x5] ss:$0 sm:$0xff] }
 0xba7   :  { %v1542_v5 = vmul.f32 %v3289_v19, %v3312_v23  ;;  %v1469_v35 = vadd.f32 %v1465_v16, %v1456_v50  ;;  %v1555_v45 = vmul.f32 %v3299_v9, %v3308_v29  ;;  %v1567_v53 = vmul.f32 %v3301_v25, %v3308_v29 }
 0xba8   :  { %v1470_v22 = vadd.f32 %v1466_v58, %v1457_v28  ;;  %v3608_v42 = vrot.slane %v3295_v14, 1  ;;  %v1577_v10 = vrot.slane %v1517_v13, 1  ;;  %v1579_v55 = vrot.slane %v3312_v23, 1 }
 0xba9   :  { %v1482_v30 = vadd.f32 %v1478_v43, %v1469_v35  ;;  %v1568_v16 = vmul.f32 %v3301_v25, %v1511_v3  ;;  %v1581_v50 = vrot.slane %v3308_v29, 1  ;;  %v1583_v0 = vrot.slane %v1511_v3, 1 }
 0xbaa   :  { %v1483_v19 = vadd.f32 %v1479_v62, %v1470_v22  ;;  %v3349_v17 = vsel %vm1234_vm3, %v3608_v42, %v1577_v10  ;;  %v1251_v58 = vadd.f32 %v3098_v51, %v3263_v31  ;;  %v3355_v43 = vsel %vm1234_vm3, %v1577_v10, %v1579_v55 }
 0xbab   :  { %3621 = vst [vmem:[#allocation20_spill] sm:$0xff] %v3349_v17  ;;  %v1495_v13 = vadd.f32 %v1491_v49, %v1482_v30  ;;  %v1604_v29 = vmul.f32 %v3338_v46, %v3349_v17  ;;  %v1252_v62 = vadd.f32 %v3134_v12, %v1227_v34  ;;  %v1261_v3 = vmul.f32 %v3119_v4, %v1238_v39 }
 0xbac   :  { %v1496_v23 = vadd.f32 %v3216_v36, %v1483_v19  ;;  %v1264_v28 = vadd.f32 %v3145_v32, %v1251_v58  ;;  %v1273_v35 = vmul.f32 %v3161_v38, %v1238_v39  ;;  %v1274_v30 = vmul.f32 %v3161_v38, %v1236_v27 }
 0xbad   :  { %v1532_v22 = vadd.f32 %v1528_v15, %v1495_v13  ;;  %v1286_v51 = vmul.f32 %v3100_v52, %v1236_v27  ;;  %v1294_v31 = vrot.slane %v1238_v39, 1  ;;  %v1265_v10 = vadd.f32 %v1261_v3, %v1252_v62 }
 0xbae   :  { %v1533_v49 = vadd.f32 %v1529_v11, %v1496_v23  ;;  %v1277_v42 = vadd.f32 %v1273_v35, %v1264_v28  ;;  %v1296_v9 = vrot.slane %v1236_v27, 1  ;;  %v1605_v19 = vmul.f32 %v3338_v46, %v3355_v43 }
 0xbaf   :  { %v1545_v17 = vadd.f32 %v1541_v47, %v1532_v22  ;;  %v3622_v4 = vrot.slane %v3128_v6, 1  ;;  %v3623_v32 = vrot.slane %v3324_v37, 1  ;;  %v1278_v36 = vadd.f32 %v1274_v30, %v1265_v10 }
 0xbb0   :  { %v1546_v52 = vadd.f32 %v1542_v5, %v1533_v49  ;;  %v1289_v34 = vadd.f32 %v1286_v51, %v1277_v42  ;;  %v1298_v27 = vsel %vm1234_vm3, %v1296_v9, 0.0  ;;  %v1300_v15 = vsel %vm1234_vm3, %v1294_v31, %v1296_v9  ;;  %v3412_v49 = vld [vmem:[#allocation7 + $0xd] ss:$0 sm:$0xff] }
 0xbb1   :  { %v1302_v12 = vsel %vm1234_vm3, %v3622_v4, %v1294_v31  ;;  %v3376_v38 = vsel %vm1234_vm3, %v1583_v0, %v3623_v32  ;;  %v1558_v39 = vadd.f32 %v1554_v21, %v1545_v17  ;;  %v3385_v11 = vsel %vm1234_vm3, %v1581_v50, %v1583_v0 }
 0xbb2   :  { %v1313_v6 = vmul.f32 %v3137_v20, %v1302_v12  ;;  %v1559_v47 = vadd.f32 %v1555_v45, %v1546_v52  ;;  %v1290_v58 = vadd.f32 %v3106_v57, %v1278_v36  ;;  %v1316_v5 = vadd.f32 %v3157_v8, %v1289_v34 }
 0xbb3   :  { %v1325_v42 = vmul.f32 %v3208_v56, %v1302_v12  ;;  %v1571_v13 = vadd.f32 %v1567_v53, %v1558_v39  ;;  %v1326_v62 = vmul.f32 %v3208_v56, %v1300_v15  ;;  %v1338_v17 = vmul.f32 %v3210_v54, %v1300_v15 }
 0xbb4   :  { %v1339_v9 = vmul.f32 %v3210_v54, %v1298_v27  ;;  %v1572_v21 = vadd.f32 %v1568_v16, %v1559_v47  ;;  %v1317_v20 = vadd.f32 %v1313_v6, %v1290_v58  ;;  %v1359_v3 = vrot.slane %v1302_v12, 1 }
 0xbb5   :  { %v1329_v23 = vadd.f32 %v1325_v42, %v1316_v5  ;;  %v1608_v0 = vadd.f32 %v1604_v29, %v1571_v13  ;;  %v1351_v45 = vmul.f32 %v3108_v59, %v1298_v27  ;;  %v1361_v28 = vrot.slane %v1300_v15, 1 }
 0xbb6   :  { %v1363_v57 = vrot.slane %v1298_v27, 1  ;;  %v1330_v35 = vadd.f32 %v1326_v62, %v1317_v20  ;;  %v3624_v22 = vrot.slane %v3151_v33, 1  ;;  %v3400_v53 = vsel %vm1234_vm3, %v1579_v55, %v1581_v50 }
 0xbb7   :  { %v1342_v8 = vadd.f32 %v1338_v17, %v1329_v23  ;;  %v3402_v54 = vadd.f32 %v1605_v19, %v1572_v21  ;;  %v1369_v29 = vsel %vm1234_vm3, %v1359_v3, %v1361_v28  ;;  %v3626_v39 = vrot.slane %v3324_v37, 1 }
 0xbb8   :  { %v1371_v56 = vsel %vm1234_vm3, %v3624_v22, %v1359_v3  ;;  %v1365_v16 = vsel %vm1234_vm3, %v1363_v57, 0.0  ;;  %v1367_v59 = vsel %vm1234_vm3, %v1361_v28, %v1363_v57  ;;  %v1343_v30 = vadd.f32 %v1339_v9, %v1330_v35 }
 0xbb9   :  { %v1354_v33 = vadd.f32 %v1351_v45, %v1342_v8  ;;  %v1381_v51 = vmul.f32 %v3231_v1, %v1371_v56  ;;  %v1382_v31 = vmul.f32 %v3231_v1, %v1369_v29  ;;  %v1394_v55 = vmul.f32 %v3233_v7, %v1369_v29 }
 0xbba   :  { %v1395_v50 = vmul.f32 %v3233_v7, %v1367_v59  ;;  %v1407_v10 = vmul.f32 %v3237_v18, %v1367_v59  ;;  %v1408_v19 = vmul.f32 %v3237_v18, %v1365_v16  ;;  %v1355_v4 = vadd.f32 %v3114_v63, %v1343_v30 }
 0xbbb   :  { %v1385_v12 = vadd.f32 %v1381_v51, %v1354_v33  ;;  %v1426_v32 = vrot.slane %v1371_v56, 1  ;;  %v1428_v52 = vrot.slane %v1369_v29, 1  ;;  %v1420_v36 = vmul.f32 %v3110_v61, %v1365_v16 }
 0xbbc   :  { %v1430_v34 = vrot.slane %v1367_v59, 1  ;;  %v1432_v27 = vrot.slane %v1365_v16, 1  ;;  %v3625_v1 = vrot.slane %v3295_v14, 1  ;;  %v1386_v15 = vadd.f32 %v1382_v31, %v1355_v4 }
 0xbbd   :  { %v1398_v6 = vadd.f32 %v1394_v55, %v1385_v12  ;;  %v1444_v63 = vsel %vm1234_vm3, %v1426_v32, %v1428_v52  ;;  %v1617_v18 = vmul.f32 %v3412_v49, %v3355_v43  ;;  %v3627_v47 = vrot.slane %v3171_v41, 1  ;;  %v3630_v55 = vld [vmem:[#allocation17_spill] sm:$0xff] }
 0xbbe   :  { %v3426_v7 = vsel %vm1234_vm3, %v3626_v39, %v3625_v1  ;;  %v1438_v61 = vsel %vm1234_vm3, %v1432_v27, 0.0  ;;  %v1440_v14 = vsel %vm1234_vm3, %v1430_v34, %v1432_v27  ;;  %v1442_v37 = vsel %vm1234_vm3, %v1428_v52, %v1430_v34  ;;  %v3632_v52 = vld [vmem:[#allocation19_spill] sm:$0xff] }
 0xbbf   :  { %v1446_v58 = vsel %vm1234_vm3, %v3627_v47, %v1426_v32  ;;  %v1399_v5 = vadd.f32 %v1395_v50, %v1386_v15  ;;  %v1411_v42 = vadd.f32 %v1407_v10, %v1398_v6  ;;  %v1454_v13 = vmul.f32 %v3256_v60, %v1444_v63 }
 0xbc0   :  { %v1455_v62 = vmul.f32 %v3256_v60, %v1442_v37  ;;  %v1467_v17 = vmul.f32 %v3258_v24, %v1442_v37  ;;  %v1468_v9 = vmul.f32 %v3258_v24, %v1440_v14  ;;  %v1480_v21 = vmul.f32 %v3265_v40, %v1440_v14 }
 0xbc1   :  { %v1481_v20 = vmul.f32 %v3265_v40, %v1438_v61  ;;  %v1412_v23 = vadd.f32 %v1408_v19, %v1399_v5  ;;  %v1423_v3 = vadd.f32 %v1420_v36, %v1411_v42  ;;  %v1500_v41 = vrot.slane %v1444_v63, 1  ;;  %v3631_v19 = vld [vmem:[#allocation18_spill] sm:$0xff] }
 0xbc2   :  { %v1502_v45 = vrot.slane %v1442_v37, 1  ;;  %v1493_v28 = vmul.f32 %v3177_v26, %v1438_v61  ;;  %v1504_v57 = vrot.slane %v1440_v14, 1  ;;  %v1506_v35 = vrot.slane %v1438_v61, 1 }
 0xbc3   :  { %v1510_v8 = vrot.slane %v1446_v58, 1  ;;  %v1424_v22 = vadd.f32 %v3117_v2, %v1412_v23  ;;  %v1458_v60 = vadd.f32 %v1454_v13, %v1423_v3  ;;  %v1618_v24 = vmul.f32 %v3412_v49, %v3400_v53  ;;  %v3633_v58 = vld [vmem:[#allocation16_spill] sm:$0xff] }
 0xbc4   :  { %v1520_v56 = vsel %vm1234_vm3, %v1500_v41, %v1502_v45  ;;  %v3628_v40 = vrot.slane %v3193_v48, 1  ;;  %v1516_v26 = vsel %vm1234_vm3, %v1504_v57, %v1506_v35  ;;  %v1518_v59 = vsel %vm1234_vm3, %v1502_v45, %v1504_v57 }
 0xbc5   :  { %v1621_v29 = vadd.f32 %v1617_v18, %v1608_v0  ;;  %v1459_v2 = vadd.f32 %v1455_v62, %v1424_v22  ;;  %v1471_v30 = vadd.f32 %v1467_v17, %v1458_v60  ;;  %v1522_v31 = vsel %vm1234_vm3, %v1510_v8, %v1500_v41  ;;  %v2295_v22 = vld [vmem:[#allocation7 + $0x1d] ss:$0 sm:$0xff] }
 0xbc6   :  { %v1514_v16 = vsel %vm1234_vm3, %v1506_v35, %v3628_v40  ;;  %v3629_v33 = vmov %v3628_v40  ;;  %v1530_v50 = vmul.f32 %v3630_v55, %v1520_v56  ;;  %v1531_v10 = vmul.f32 %v3630_v55, %v1518_v59 }
 0xbc7   :  { %v1512_v51 = vsel %vm1234_vm3, %v3629_v33, %v1510_v8  ;;  %v1543_v4 = vmul.f32 %v3631_v19, %v1518_v59  ;;  %v1544_v12 = vmul.f32 %v3631_v19, %v1516_v26  ;;  %v1472_v32 = vadd.f32 %v1468_v9, %v1459_v2 }
 0xbc8   :  { %v1484_v0 = vadd.f32 %v1480_v21, %v1471_v30  ;;  %v1556_v36 = vmul.f32 %v3632_v52, %v1516_v26  ;;  %v1557_v48 = vmul.f32 %v3632_v52, %v1514_v16  ;;  %v1569_v34 = vmul.f32 %v3301_v25, %v1514_v16 }
 0xbc9   :  { %v1576_v27 = vrot.slane %v1520_v56, 1  ;;  %v1578_v1 = vrot.slane %v1518_v59, 1  ;;  %v1580_v39 = vrot.slane %v1516_v26, 1  ;;  %v1485_v15 = vadd.f32 %v1481_v20, %v1472_v32  ;;  %v2294_v20 = vld [vmem:[#allocation7 + $0x15] ss:$0 sm:$0xff] }
 0xbca   :  { %v1497_v6 = vadd.f32 %v1493_v28, %v1484_v0  ;;  %v1582_v63 = vrot.slane %v1514_v16, 1  ;;  %v1584_v18 = vrot.slane %v1512_v51, 1  ;;  %v1570_v61 = vmul.f32 %v3301_v25, %v1512_v51 }
 0xbcb   :  { %v1586_v14 = vrot.slane %v1522_v31, 1  ;;  %v3478_v37 = vsel %vm1234_vm3, %v1578_v1, %v1580_v39  ;;  %v1596_v47 = vsel %vm1234_vm3, %v1576_v27, %v1578_v1  ;;  %v1498_v5 = vadd.f32 %v3633_v58, %v1485_v15 }
 0xbcc   :  { %v1534_v42 = vadd.f32 %v1530_v50, %v1497_v6  ;;  %v1590_v13 = vsel %vm1234_vm3, %v1582_v63, %v1584_v18  ;;  %v1592_v62 = vsel %vm1234_vm3, %v1580_v39, %v1582_v63  ;;  %v1606_v9 = vmul.f32 %v3338_v46, %v1596_v47  ;;  %v2296_v6 = vld [vmem:[#allocation7 + $0x6] ss:$0 sm:$0xff] }
 0xbcd   :  { %v1588_v25 = vsel %vm1234_vm3, %v1584_v18, %v1586_v14  ;;  %v1598_v17 = vsel %vm1234_vm3, %v1586_v14, %v1576_v27  ;;  %v1622_v21 = vadd.f32 %v1618_v24, %v3402_v54  ;;  %v1535_v23 = vadd.f32 %v1531_v10, %v1498_v5 }
 0xbce   :  { %v1547_v3 = vadd.f32 %v1543_v4, %v1534_v42  ;;  %v1607_v41 = vmul.f32 %v3338_v46, %v3478_v37  ;;  %v1619_v45 = vmul.f32 %v3412_v49, %v3478_v37  ;;  %v1620_v28 = vmul.f32 %v3412_v49, %v1592_v62  ;;  %v3634_v4 = vld [vmem:[#allocation20_spill] sm:$0xff] }
 0xbcf   :  { %v1632_v57 = vmul.f32 %v2294_v20, %v1592_v62  ;;  %v1633_v35 = vmul.f32 %v2294_v20, %v1590_v13  ;;  %v1652_v8 = vrot.slane %v1596_v47, 1  ;;  %v1548_v60 = vadd.f32 %v1544_v12, %v1535_v23 }
 0xbd0   :  { %v1560_v56 = vadd.f32 %v1556_v36, %v1547_v3  ;;  %v1654_v40 = vrot.slane %v3478_v37, 1  ;;  %v1656_v54 = vrot.slane %v1592_v62, 1  ;;  %v1658_v24 = vrot.slane %v1590_v13, 1 }
 0xbd1   :  { %v1660_v16 = vrot.slane %v1588_v25, 1  ;;  %v1630_v26 = vmul.f32 %v2294_v20, %v3400_v53  ;;  %v1631_v46 = vmul.f32 %v2294_v20, %v3385_v11  ;;  %v1561_v59 = vadd.f32 %v1557_v48, %v1548_v60 }
 0xbd2   :  { %v1573_v2 = vadd.f32 %v1569_v34, %v1560_v56  ;;  %v1662_v30 = vrot.slane %v1598_v17, 1  ;;  %v1643_v49 = vmul.f32 %v2295_v22, %v3385_v11  ;;  %v1644_v31 = vmul.f32 %v2295_v22, %v3376_v38 }
 0xbd3   :  { %v1634_v33 = vadd.f32 %v1630_v26, %v1621_v29  ;;  %v1635_v51 = vadd.f32 %v1631_v46, %v1622_v21  ;;  %v1645_v55 = vmul.f32 %v2295_v22, %v1590_v13  ;;  %v1574_v50 = vadd.f32 %v1570_v61, %v1561_v59  ;;  %v2298_v13 = vld [vmem:[#allocation7 + $0x16] ss:$0 sm:$0xff] }
 0xbd4   :  { %v1610_v10 = vadd.f32 %v1606_v9, %v1573_v2  ;;  %v1646_v19 = vmul.f32 %v2295_v22, %v1588_v25  ;;  %v1651_v12 = vrot.slane %v3634_v4, 1  ;;  %v1653_v0 = vrot.slane %v3355_v43, 1 }
 0xbd5   :  { %v1647_v32 = vadd.f32 %v1643_v49, %v1634_v33  ;;  %v1655_v52 = vrot.slane %v3400_v53, 1  ;;  %v1657_v36 = vrot.slane %v3385_v11, 1  ;;  %v1611_v48 = vadd.f32 %v1607_v41, %v1574_v50  ;;  %v2299_v41 = vld [vmem:[#allocation7 + $0x1e] ss:$0 sm:$0xff]  ;;  %v2300_v49 = vld [vmem:[#allocation7 + $0x69] ss:$0 sm:$0xff] }
 0xbd6   :  { %v1623_v34 = vadd.f32 %v1619_v45, %v1610_v10  ;;  %v1659_v29 = vrot.slane %v3376_v38, 1  ;;  %v1661_v27 = vrot.slane %v3426_v7, 1  ;;  %v1648_v1 = vadd.f32 %v1644_v31, %v1635_v51  ;;  %v2297_v7 = vld [vmem:[#allocation7 + $0xe] ss:$0 sm:$0xff] }
 0xbd7   :  { %v1664_v39 = vsel %vm1234_vm3, %v1660_v16, %v1662_v30  ;;  %v1666_v15 = vsel %vm1234_vm3, %v1658_v24, %v1660_v16  ;;  %v1667_v43 = vsel %vm1234_vm3, %v1655_v52, %v1657_v36  ;;  %v1624_v53 = vadd.f32 %v1620_v28, %v1611_v48 }
 0xbd8   :  { %v1636_v63 = vadd.f32 %v1632_v57, %v1623_v34  ;;  %v1663_v11 = vsel %vm1234_vm3, %v1659_v29, %v1661_v27  ;;  %v1668_v38 = vsel %vm1234_vm3, %v1656_v54, %v1658_v24  ;;  %v1669_v18 = vsel %vm1234_vm3, %v1653_v0, %v1655_v52 }
 0xbd9   :  { %v1670_v61 = vsel %vm1234_vm3, %v1654_v40, %v1656_v54  ;;  %v1671_v14 = vsel %vm1234_vm3, %v1651_v12, %v1653_v0  ;;  %v1672_v37 = vsel %vm1234_vm3, %v1652_v8, %v1654_v40  ;;  %v1637_v47 = vadd.f32 %v1633_v35, %v1624_v53 }
 0xbda   :  { %v1649_v58 = vadd.f32 %v1645_v55, %v1636_v63  ;;  %v1678_v5 = vmul.f32 %v2296_v6, %v1671_v14  ;;  %v1679_v42 = vmul.f32 %v2296_v6, %v1669_v18  ;;  %v1665_v62 = vsel %vm1234_vm3, %v1657_v36, %v1659_v29 }
 0xbdb   :  { %v1680_v25 = vmul.f32 %v2296_v6, %v1672_v37  ;;  %v1681_v17 = vmul.f32 %v2296_v6, %v1670_v61  ;;  %v1691_v9 = vmul.f32 %v2297_v7, %v1669_v18  ;;  %v1650_v21 = vadd.f32 %v1646_v19, %v1637_v47 }
 0xbdc   :  { %v1682_v20 = vadd.f32 %v1678_v5, %v1647_v32  ;;  %v1683_v23 = vadd.f32 %v1679_v42, %v1648_v1  ;;  %v1692_v3 = vmul.f32 %v2297_v7, %v1667_v43  ;;  %v1693_v28 = vmul.f32 %v2297_v7, %v1670_v61 }
 0xbdd   :  { %v1684_v45 = vadd.f32 %v1680_v25, %v1649_v58  ;;  %v1694_v57 = vmul.f32 %v2297_v7, %v1668_v38  ;;  %v1704_v8 = vmul.f32 %v2298_v13, %v1667_v43  ;;  %v1685_v35 = vadd.f32 %v1681_v17, %v1650_v21 }
 0xbde   :  { %v1695_v22 = vadd.f32 %v1691_v9, %v1682_v20  ;;  %v1696_v60 = vadd.f32 %v1692_v3, %v1683_v23  ;;  %v1705_v56 = vmul.f32 %v2298_v13, %v1665_v62  ;;  %v1706_v54 = vmul.f32 %v2298_v13, %v1668_v38 }
 0xbdf   :  { %v1697_v40 = vadd.f32 %v1693_v28, %v1684_v45  ;;  %v1707_v44 = vmul.f32 %v2298_v13, %v1666_v15  ;;  %v1717_v24 = vmul.f32 %v2299_v41, %v1665_v62  ;;  %v1698_v16 = vadd.f32 %v1694_v57, %v1685_v35 }
 0xbe0   :  { %v1708_v26 = vadd.f32 %v1704_v8, %v1695_v22  ;;  %v1709_v46 = vadd.f32 %v1705_v56, %v1696_v60  ;;  %v1718_v59 = vmul.f32 %v2299_v41, %v1663_v11  ;;  %v1719_v30 = vmul.f32 %v2299_v41, %v1666_v15  ;;  %v2301_v8 = vld [vmem:[#allocation7 + $0x6a] ss:$0 sm:$0xff] }
 0xbe1   :  { %v1710_v2 = vadd.f32 %v1706_v54, %v1697_v40  ;;  %v1711_v33 = vadd.f32 %v1707_v44, %v1698_v16  ;;  %v1720_v51 = vmul.f32 %v2299_v41, %v1664_v39  ;;  %v2302_v40 = vld [vmem:[#allocation7 + $0x6b] ss:$0 sm:$0xff] }
 0xbe2   :  { %v1721_v31 = vadd.f32 %v1717_v24, %v1708_v26  ;;  %v1722_v55 = vadd.f32 %v1718_v59, %v1709_v46 }
 0xbe3   :  { %v1723_v50 = vadd.f32 %v1719_v30, %v1710_v2  ;;  %v1724_v10 = vadd.f32 %v1720_v51, %v1711_v33 }
 0xbe4   :  { %v1730_v19 = vadd.f32 %v2300_v49, %v1721_v31  ;;  %v1731_v4 = vadd.f32 %v2300_v49, %v1722_v55 }
 0xbe5   :  { %v1732_v12 = vadd.f32 %v2300_v49, %v1723_v50  ;;  %v1733_v32 = vadd.f32 %v2300_v49, %v1724_v10 }
 0xbe6   :  { %v1734_v0 = vsel %vm207_vm1, %v1730_v19, 0.0  ;;  %v1735_v52 = vsel %vm207_vm1, %v1731_v4, 0.0 }
 0xbe7   :  { %v1736_v36 = vadd.f32 %v1735_v52, %v1734_v0  ;;  %v1737_v48 = vsel %vm207_vm1, %v1732_v12, 0.0  ;;  %v1739_v34 = vsel %vm207_vm1, %v1733_v32, 0.0 }
 0xbe9   :  { %v1738_v29 = vadd.f32 %v1737_v48, %v1736_v36 }
 0xbeb   :  { %v1740_v27 = vadd.f32 %v1739_v34, %v1738_v29 }
 0xbed   :  { %v1741_v1 = vrot.slane %v1740_v27, 4 }
 0xbef   :  { %v1742_v39 = vadd.f32 %v1741_v1, %v1740_v27 }
 0xbf1   :  { %v1743_v15 = vrot.slane %v1742_v39, 2 }
 0xbf3   :  { %v1744_v43 = vadd.f32 %v1743_v15, %v1742_v39 }
 0xbf5   :  { %v1745_v6 = vrot.slane %v1744_v43, 1 }
 0xbf7   :  { %v1746_v53 = vadd.f32 %v1745_v6, %v1744_v43  ;;  %v2564_v43 = vld [vmem:[#allocation5 + $0x80] sm:$0xff]   ;;  %v2565_v6 = vld [vmem:[#allocation5 + $0x88] sm:$0xff]  }
 0xbf8   :  { %2512 = vmatprep.subr.bf16.mxu1 %v2564_v43 }
 0xbf9   :  { %v1747_v63 = vmul.f32 0.03125, %v1746_v53  ;;  %2513 = vmatpush3.bf16.msra.mxu1 %v2564_v43  ;;  %v2307_v53 = vld [vmem:[#allocation7 + $0x6c] ss:$0 sm:$0xff] }
 0xbfa   :  { %2514 = vmatprep.subr.bf16.mxu1 %v2565_v6 }
 0xbfb   :  { %v1748_v11 = vsub.f32 %v1730_v19, %v1747_v63  ;;  %v1749_v38 = vsub.f32 %v1731_v4, %v1747_v63  ;;  %v1750_v7 = vsub.f32 %v1732_v12, %v1747_v63  ;;  %v1751_v18 = vsub.f32 %v1733_v32, %v1747_v63 }
 0xbfd   :  { %v1752_v61 = vmul.f32 %v1748_v11, %v1748_v11  ;;  %v1753_v14 = vmul.f32 %v1749_v38, %v1749_v38  ;;  %v1754_v37 = vmul.f32 %v1750_v7, %v1750_v7  ;;  %v1755_v47 = vmul.f32 %v1751_v18, %v1751_v18  ;;  %2515 = vmatpush3.bf16.msra.mxu1 %v2565_v6 }
 0xbff   :  { %v1756_v58 = vsel %vm207_vm1, %v1752_v61, 0.0  ;;  %v1757_v5 = vsel %vm207_vm1, %v1753_v14, 0.0  ;;  %v1759_v13 = vsel %vm207_vm1, %v1754_v37, 0.0  ;;  %v1761_v25 = vsel %vm207_vm1, %v1755_v47, 0.0  ;;  %v3635_v47 = vld [vmem:[#allocation15_spill] sm:$0xff] }
 0xc00   :  { %v1758_v42 = vadd.f32 %v1757_v5, %v1756_v58  ;;  %v3636_v5 = vld [vmem:[#allocation12_spill] sm:$0xff] }
 0xc02   :  { %v1760_v62 = vadd.f32 %v1759_v13, %v1758_v42  ;;  %v3637_v13 = vld [vmem:[#allocation14_spill] sm:$0xff] }
 0xc04   :  { %v1762_v17 = vadd.f32 %v1761_v25, %v1760_v62  ;;  %v3638_v25 = vld [vmem:[#allocation13_spill] sm:$0xff] }
 0xc06   :  { %v1763_v9 = vrot.slane %v1762_v17, 4 }
 0xc08   :  { %v1764_v21 = vadd.f32 %v1763_v9, %v1762_v17 }
 0xc0a   :  { %v1765_v20 = vrot.slane %v1764_v21, 2 }
 0xc0c   :  { %v1766_v23 = vadd.f32 %v1765_v20, %v1764_v21  ;;  %v2566_v20 = vld [vmem:[#allocation5 + $0x90] sm:$0xff]  }
 0xc0d   :  { %2520 = vmatprep.subr.bf16.mxu1 %v2566_v20 }
 0xc0e   :  { %v1767_v3 = vrot.slane %v1766_v23, 1 }
 0xc10   :  { %v1768_v41 = vadd.f32 %v1767_v3, %v1766_v23  ;;  %v2567_v23 = vld [vmem:[#allocation5 + $0x98] sm:$0xff]   ;;  %v2568_v3 = vld [vmem:[#allocation5 + $0xa0] sm:$0xff]  }
 0xc12   :  { %v1769_v45 = vmul.f32 0.03125, %v1768_v41  ;;  %v2569_v41 = vld [vmem:[#allocation5 + $0xa8] sm:$0xff]  }
 0xc14   :  { %v1770_v28 = vadd.f32 1e-05, %v1769_v45  ;;  %v2314_v45 = vld [vmem:[#allocation7 + $0x6d] ss:$0 sm:$0xff] }
 0xc16   :  { %2634 = vrsqrt.f32 %v1770_v28 }
 0xc20   :  { %v2635_v57 = vpop.eup %2634 }
 0xc21   :  { %v1772_v35 = vmul.f32 %v2635_v57, %v1748_v11  ;;  %v1773_v22 = vmul.f32 %v2635_v57, %v1749_v38  ;;  %v1774_v60 = vmul.f32 %v2635_v57, %v1750_v7  ;;  %v1775_v56 = vmul.f32 %v2635_v57, %v1751_v18 }
 0xc23   :  { %v1781_v54 = vmul.f32 %v2301_v8, %v1772_v35  ;;  %v1782_v44 = vmul.f32 %v2301_v8, %v1773_v22  ;;  %v1783_v24 = vmul.f32 %v2301_v8, %v1774_v60  ;;  %v1784_v16 = vmul.f32 %v2301_v8, %v1775_v56 }
 0xc25   :  { %v1790_v26 = vadd.f32 %v2302_v40, %v1781_v54  ;;  %v1791_v46 = vadd.f32 %v2302_v40, %v1782_v44  ;;  %v1792_v59 = vadd.f32 %v2302_v40, %v1783_v24  ;;  %v1793_v2 = vadd.f32 %v2302_v40, %v1784_v16 }
 0xc27   :  { %v2303_v30 = vmul.f32 -1.442695, %v1790_v26  ;;  %v2304_v49 = vmul.f32 -1.442695, %v1791_v46  ;;  %v2305_v33 = vmul.f32 -1.442695, %v1792_v59 }
 0xc28   :  { %v2306_v51 = vmul.f32 -1.442695, %v1793_v2 }
 0xc29   :  { %2636 = vpow2.f32 %v2303_v30 }
 0xc2a   :  { %2638 = vpow2.f32 %v2304_v49 }
 0xc2b   :  { %2640 = vpow2.f32 %v2305_v33 }
 0xc2c   :  { %2642 = vpow2.f32 %v2306_v51 }
 0xc33   :  { %v2637_v31 = vpop.eup %2636 }
 0xc34   :  { %v2639_v55 = vpop.eup %2638  ;;  %v1806_v50 = vadd.f32 1.0, %v2637_v31 }
 0xc35   :  { %v2641_v10 = vpop.eup %2640  ;;  %v1807_v19 = vadd.f32 1.0, %v2639_v55 }
 0xc36   :  { %v2643_v4 = vpop.eup %2642  ;;  %2644 = vrcp.f32 %v1806_v50  ;;  %v1808_v12 = vadd.f32 1.0, %v2641_v10 }
 0xc37   :  { %2646 = vrcp.f32 %v1807_v19  ;;  %v1809_v32 = vadd.f32 1.0, %v2643_v4 }
 0xc38   :  { %2648 = vrcp.f32 %v1808_v12 }
 0xc39   :  { %2650 = vrcp.f32 %v1809_v32 }
 0xc40   :  { %v2645_v0 = vpop.eup %2644 }
 0xc41   :  { %v2647_v52 = vpop.eup %2646  ;;  %v1818_v36 = vmul.f32 %v2645_v0, %v1790_v26 }
 0xc42   :  { %v2649_v48 = vpop.eup %2648  ;;  %v1819_v34 = vmul.f32 %v2647_v52, %v1791_v46 }
 0xc43   :  { %v2651_v29 = vpop.eup %2650  ;;  %v1820_v27 = vmul.f32 %v2649_v48, %v1792_v59 }
 0xc44   :  { %v1830_v1 = vpack.c.bf16 %v1819_v34, %v1818_v36  ;;  %v1821_v39 = vmul.f32 %v2651_v29, %v1793_v2  ;;  %v2323_v36 = vld [vmem:[#allocation7 + $0x6e] ss:$0 sm:$0xff] }
 0xc46   :  { %2508 = vmatprep.mubr.msk.bf16.mxu0 %vm207_vm1, %v1830_v1  ;;  %v1831_v15 = vpack.c.bf16 %v1821_v39, %v1820_v27 }
 0xc48   :  { %2509 = vmatmul.mubr.msk.bf16.vlgmr.msra.gmra.mrb[20].mxu0 %vm207_vm1, %v1831_v15 }
 0xd1b   :  { %v2510_v63 = vpop.f32.mrb[20].mxu0 }
 0xd1c   :  { %v1901_v11 = vpop.f32.mrb[21].mxu0  ;;  %v1910_v18 = vadd.f32 %v2510_v63, %v2307_v53 }
 0xd1d   :  { %v1902_v38 = vadd.f32 %v2307_v53, %v1901_v11  ;;  %v2511_v7 = vpop.f32.mrb[22].mxu0 }
 0xd1e   :  { %v1913_v61 = vadd.f32 %v2511_v7, %v2307_v53  ;;  %v1904_v14 = vpop.f32.mrb[23].mxu0  ;;  %v3549_v17 = vadd.f32 %v1910_v18, %v3638_v25 }
 0xd1f   :  { %v1905_v37 = vadd.f32 %v2307_v53, %v1904_v14  ;;  %v3543_v42 = vadd.f32 %v1902_v38, %v3636_v5 }
 0xd20   :  { %v3540_v58 = vadd.f32 %v1913_v61, %v3635_v47 }
 0xd21   :  { %v3546_v62 = vadd.f32 %v1905_v37, %v3637_v13 }
 0xd22   :  { %v1925_v21 = vpack.c.bf16 %v3540_v58, %v3549_v17 }
 0xd23   :  { %v1924_v9 = vpack.c.bf16 %v3546_v62, %v3543_v42 }
 0xd25   :  { %2516 = vmatprep.mubr.msk.bf16.mxu1 %vm84_vm0, %v1924_v9 }
 0xd26   :  { %2517 = vmatmul.mubr.msk.bf16.vlgmr.msra.gmra.mrb[20].mxu1 %vm84_vm0, %v1925_v21 }
 0xd27   :  { %2521 = vmatpush3.bf16.msra.mxu1 %v2566_v20 }
 0xd28   :  { %2522 = vmatprep.subr.bf16.mxu1 %v2567_v23 }
 0xd2b   :  { %2523 = vmatpush3.bf16.msra.mxu1 %v2567_v23 }
 0xd2c   :  { %2524 = vmatprep.subr.bf16.mxu1 %v2568_v3 }
 0xd2f   :  { %2525 = vmatpush3.bf16.msra.mxu1 %v2568_v3 }
 0xd30   :  { %2526 = vmatprep.subr.bf16.mxu1 %v2569_v41 }
 0xd33   :  { %2527 = vmatpush3.bf16.msra.mxu1 %v2569_v41 }
 0xdf9   :  { %v2518_v28 = vpop.f32.mrb[20].mxu1 }
 0xdfa   :  { %v1992_v57 = vadd.f32 %v2518_v28, %v2314_v45  ;;  %v1983_v8 = vpop.f32.mrb[21].mxu1 }
 0xdfb   :  { %v1984_v35 = vadd.f32 %v2314_v45, %v1983_v8  ;;  %v2519_v22 = vpop.f32.mrb[22].mxu1 }
 0xdfc   :  { %v2321_v60 = vmul.f32 -1.442695, %v1992_v57  ;;  %v1995_v56 = vadd.f32 %v2519_v22, %v2314_v45  ;;  %v1986_v40 = vpop.f32.mrb[23].mxu1 }
 0xdfd   :  { %v2319_v54 = vmul.f32 -1.442695, %v1984_v35  ;;  %v1987_v44 = vadd.f32 %v2314_v45, %v1986_v40 }
 0xdfe   :  { %2652 = vpow2.f32 %v2321_v60  ;;  %v2322_v24 = vmul.f32 -1.442695, %v1995_v56 }
 0xdff   :  { %2654 = vpow2.f32 %v2319_v54  ;;  %v2320_v16 = vmul.f32 -1.442695, %v1987_v44 }
 0xe00   :  { %2656 = vpow2.f32 %v2322_v24 }
 0xe01   :  { %2658 = vpow2.f32 %v2320_v16 }
 0xe08   :  { %v2653_v26 = vpop.eup %2652 }
 0xe09   :  { %v2655_v46 = vpop.eup %2654  ;;  %v2012_v59 = vadd.f32 1.0, %v2653_v26 }
 0xe0a   :  { %v2657_v2 = vpop.eup %2656  ;;  %v2010_v30 = vadd.f32 1.0, %v2655_v46 }
 0xe0b   :  { %v2659_v49 = vpop.eup %2658  ;;  %2660 = vrcp.f32 %v2012_v59  ;;  %v2013_v33 = vadd.f32 1.0, %v2657_v2 }
 0xe0c   :  { %2662 = vrcp.f32 %v2010_v30  ;;  %v2011_v51 = vadd.f32 1.0, %v2659_v49 }
 0xe0d   :  { %2664 = vrcp.f32 %v2013_v33 }
 0xe0e   :  { %2666 = vrcp.f32 %v2011_v51 }
 0xe15   :  { %v2661_v31 = vpop.eup %2660 }
 0xe16   :  { %v2663_v55 = vpop.eup %2662  ;;  %v2024_v19 = vmul.f32 %v2661_v31, %v1992_v57  ;;  %v2330_v31 = vld [vmem:[#allocation7 + $0x6f] ss:$0 sm:$0xff] }
 0xe17   :  { %v2665_v50 = vpop.eup %2664  ;;  %v2022_v12 = vmul.f32 %v2663_v55, %v1984_v35 }
 0xe18   :  { %v2667_v10 = vpop.eup %2666  ;;  %v2025_v4 = vmul.f32 %v2665_v50, %v1995_v56 }
 0xe19   :  { %v2023_v32 = vmul.f32 %v2667_v10, %v1987_v44  ;;  %v2331_v10 = vld [vmem:[#allocation7 + $0x70] ss:$0 sm:$0xff] }
 0xe1a   :  { %v2035_v0 = vpack.c.bf16 %v2025_v4, %v2024_v19 }
 0xe1b   :  { %v2034_v52 = vpack.c.bf16 %v2023_v32, %v2022_v12 }
 0xe1d   :  { %2528 = vmatprep.mubr.msk.bf16.mxu1 %vm207_vm1, %v2034_v52 }
 0xe1e   :  { %2529 = vmatmul.mubr.msk.bf16.vlgmr.msra.gmra.mrb[24].mxu1 %vm207_vm1, %v2035_v0 }
 0xef1   :  { %v2530_v48 = vpop.f32.mrb[24].mxu1 }
 0xef2   :  { %v2114_v34 = vadd.f32 %v2530_v48, %v2323_v36  ;;  %v2105_v29 = vpop.f32.mrb[25].mxu1 }
 0xef3   :  { %v2106_v27 = vadd.f32 %v2323_v36, %v2105_v29  ;;  %v2531_v1 = vpop.f32.mrb[26].mxu1 }
 0xef4   :  { %v2108_v39 = vpop.f32.mrb[27].mxu1  ;;  %v2122_v15 = vmul.f32 0.5, %v2114_v34  ;;  %v2117_v6 = vadd.f32 %v2531_v1, %v2323_v36 }
 0xef5   :  { %v2120_v43 = vmul.f32 0.5, %v2106_v27  ;;  %v2109_v53 = vadd.f32 %v2323_v36, %v2108_v39 }
 0xef6   :  { %v2123_v38 = vmul.f32 0.5, %v2117_v6  ;;  %v2126_v61 = vadd.f32 %v2122_v15, %v3549_v17 }
 0xef7   :  { %v2121_v63 = vmul.f32 0.5, %v2109_v53  ;;  %v2124_v11 = vadd.f32 %v2120_v43, %v3543_v42 }
 0xef8   :  { %v2134_v37 = vsel %vm84_vm0, %v2126_v61, 0.0  ;;  %v2127_v47 = vadd.f32 %v2123_v38, %v3540_v58 }
 0xef9   :  { %v2128_v7 = vsel %vm84_vm0, %v2124_v11, 0.0  ;;  %v2125_v18 = vadd.f32 %v2121_v63, %v3546_v62 }
 0xefa   :  { %2129 = vadd.xlane.f32.xlu0 %v2128_v7  ;;  %v2137_v5 = vsel %vm84_vm0, %v2127_v47, 0.0 }
 0xefb   :  { %v2131_v14 = vsel %vm84_vm0, %v2125_v18, 0.0 }
 0xefc   :  { %2132 = vadd.xlane.f32.xlu1 %v2131_v14 }
 0xefe   :  { %2135 = vadd.xlane.f32.xlu0 %v2134_v37 }
 0xf02   :  { %2138 = vadd.xlane.f32.xlu0 %v2137_v5 }
 0xf87   :  { %v2130_v42 = vpop.xlane.xlu0 %2129 }
 0xf88   :  { %v2140_v13 = vmul.f32 0.03125, %v2130_v42 }
 0xf89   :  { %v2133_v25 = vpop.xlane.xlu1 %2132 }
 0xf8a   :  { %v2144_v9 = vsub.f32 %v2124_v11, %v2140_v13  ;;  %v2141_v21 = vmul.f32 0.03125, %v2133_v25 }
 0xf8b   :  { %v2136_v62 = vpop.xlane.xlu0 %2135 }
 0xf8c   :  { %v2145_v20 = vsub.f32 %v2125_v18, %v2141_v21  ;;  %v2142_v17 = vmul.f32 0.03125, %v2136_v62  ;;  %v2148_v23 = vmul.f32 %v2144_v9, %v2144_v9 }
 0xf8e   :  { %v2146_v3 = vsub.f32 %v2126_v61, %v2142_v17  ;;  %v2152_v41 = vsel %vm84_vm0, %v2148_v23, 0.0  ;;  %v2149_v45 = vmul.f32 %v2145_v20, %v2145_v20 }
 0xf8f   :  { %2153 = vadd.xlane.f32.xlu0 %v2152_v41  ;;  %v2139_v28 = vpop.xlane.xlu0 %2138 }
 0xf90   :  { %v2143_v58 = vmul.f32 0.03125, %v2139_v28  ;;  %v2155_v57 = vsel %vm84_vm0, %v2149_v45, 0.0  ;;  %v2150_v8 = vmul.f32 %v2146_v3, %v2146_v3 }
 0xf91   :  { %2156 = vadd.xlane.f32.xlu1 %v2155_v57 }
 0xf92   :  { %v2147_v35 = vsub.f32 %v2127_v47, %v2143_v58  ;;  %v2158_v22 = vsel %vm84_vm0, %v2150_v8, 0.0 }
 0xf93   :  { %2159 = vadd.xlane.f32.xlu0 %v2158_v22 }
 0xf94   :  { %v2151_v60 = vmul.f32 %v2147_v35, %v2147_v35 }
 0xf96   :  { %v2161_v56 = vsel %vm84_vm0, %v2151_v60, 0.0 }
 0xf97   :  { %2162 = vadd.xlane.f32.xlu1 %v2161_v56 }
0x101c   :  { %v2154_v40 = vpop.xlane.xlu0 %2153 }
0x101d   :  { %v2164_v54 = vmul.f32 0.03125, %v2154_v40 }
0x101e   :  { %v2157_v44 = vpop.xlane.xlu1 %2156 }
0x101f   :  { %v2168_v24 = vadd.f32 1e-05, %v2164_v54  ;;  %v2165_v16 = vmul.f32 0.03125, %v2157_v44 }
0x1020   :  { %v2160_v26 = vpop.xlane.xlu0 %2159 }
0x1021   :  { %2668 = vrsqrt.f32 %v2168_v24  ;;  %v2169_v46 = vadd.f32 1e-05, %v2165_v16  ;;  %v2166_v59 = vmul.f32 0.03125, %v2160_v26 }
0x1023   :  { %2670 = vrsqrt.f32 %v2169_v46  ;;  %v2170_v2 = vadd.f32 1e-05, %v2166_v59 }
0x1024   :  { %v2163_v30 = vpop.xlane.xlu1 %2162 }
0x1025   :  { %2672 = vrsqrt.f32 %v2170_v2  ;;  %v2167_v49 = vmul.f32 0.03125, %v2163_v30 }
0x1027   :  { %v2171_v33 = vadd.f32 1e-05, %v2167_v49 }
0x1029   :  { %2674 = vrsqrt.f32 %v2171_v33 }
0x102b   :  { %v2669_v51 = vpop.eup %2668 }
0x102c   :  { %v2176_v55 = vmul.f32 %v2669_v51, %v2144_v9 }
0x102d   :  { %v2671_v50 = vpop.eup %2670 }
0x102e   :  { %v2185_v19 = vmul.f32 %v2330_v31, %v2176_v55  ;;  %v2177_v4 = vmul.f32 %v2671_v50, %v2145_v20 }
0x102f   :  { %v2673_v12 = vpop.eup %2672 }
0x1030   :  { %v2186_v32 = vmul.f32 %v2330_v31, %v2177_v4  ;;  %v2178_v0 = vmul.f32 %v2673_v12, %v2146_v3  ;;  %v2194_v52 = vadd.f32 %v2331_v10, %v2185_v19 }
0x1032   :  { %v2187_v36 = vmul.f32 %v2330_v31, %v2178_v0  ;;  %v2195_v48 = vadd.f32 %v2331_v10, %v2186_v32  ;;  %2198 = vst.msk [vmem:[#allocation8] sm:$0xff] %vm84_vm0, %v2194_v52 }
0x1033   :  { %v2675_v34 = vpop.eup %2674 }
0x1034   :  { %v2179_v29 = vmul.f32 %v2675_v34, %v2147_v35  ;;  %v2196_v27 = vadd.f32 %v2331_v10, %v2187_v36  ;;  %2199 = vst.msk [vmem:[#allocation8 + $0x8] sm:$0xff] %vm84_vm0, %v2195_v48 }
0x1036   :  { %v2188_v1 = vmul.f32 %v2330_v31, %v2179_v29  ;;  %2200 = vst.msk [vmem:[#allocation8 + $0x10] sm:$0xff] %vm84_vm0, %v2196_v27 }
0x1038   :  { %v2197_v39 = vadd.f32 %v2331_v10, %v2188_v1 }
0x103a   :  { %2201 = vst.msk [vmem:[#allocation8 + $0x18] sm:$0xff] %vm84_vm0, %v2197_v39 }
0x103b   :  { %2753 = shalt.err (!%p2750_p0)
}
0x103c   :  { %s2754_s29 = scalar_lea.hbm %s3593_s3, 512 }
0x103d   :  { %p2755_p1 = scmp.ne.s32.totalorder %s3593_s3, %s2754_s29  ;;  %p2758_p2 = scmp.lt.u32.totalorder %s2754_s29, %s3593_s3 }
0x103f   :  { %p2760_p3 = pnand %p2758_p2, %p2755_p1 }
0x1041   :  { %2763 = shalt.err (!%p2760_p3)
}
0x1042   :  { %2213 = dma.vmem_to_hbm [thread:$0]  %s2208_s25, 512, %s3593_s3, [#allocation4], %s2774_s1, %s2774_s1, %s2775_s9  }
0x1043   :  { %2768 = dma.done.wait [#allocation4], 512  }
0x1044   :  { %2769 = vsyncadd [#allocation4], 4294966784 }
0x1045   :  { %2217 = vsyncpa [#allocation3], 1 }
0x1046   :  { %2218 = vsyncpa [#allocation6], 1 }
0x1047   :  { %2219 = vsyncpa [#allocation4], 1 }

</bundles_post_ra>
